<compile_context>
chip_gen: v6e
topology: v6e:2x2x1
jax: 0.10.0
libtpu: 0.0.40
codegen_flags: <defaults>
</compile_context>

<pallas_src>
import jax
import jax.numpy as jnp
import numpy as np
from jax.experimental import pallas as pl
from jax.experimental.pallas import tpu as pltpu


# ----------------------------------------------------------------------------
# Kernel: whole forward in a single invocation (everything resident in VMEM)
# ----------------------------------------------------------------------------
def _lstm_wavefront_kernel(x2d_ref, mask_ref, wx_ref, ball_ref, wwave_ref,
                           wfc_ref, bfc_ref, out_ref):
    T, B, _ = mask_ref.shape
    H2, H8 = wwave_ref.shape          # (2H, 8H)
    H = H2 // 2

    # ---- prologue: all loop-invariant work hoisted off the serial chain ----
    # One big input projection for every timestep of layer 0; the layer-1
    # columns of wx are zero, so the right half of the result is just b1.
    xg_all = (jnp.dot(x2d_ref[...], wx_ref[...],
                      preferred_element_type=jnp.float32)
              + ball_ref[...])                       # (T*B, 8H)
    xg_all = xg_all.reshape(T, B, H8)                # leading-dim index per wave

    masks = mask_ref[...] != 0                       # (T, B, 1) bool, kept narrow
    w_wave = wwave_ref[...]

    zeros = jnp.zeros((B, H), jnp.float32)
    h0, c0, h1, c1 = zeros, zeros, zeros, zeros

    # ---- recurrence: T+1 statically-unrolled waves -------------------------
    # Wave w: layer-0 step w (skipped at w == T) and layer-1 step w-1
    # (skipped at w == 0).  Both consume state produced by wave w-1.
    for w in range(T + 1):
        do_l0 = w < T
        do_l1 = w >= 1

        xh = jnp.concatenate([h0, h1], axis=-1)      # (B, 2H), cheap XLU concat
        g_all = (jnp.dot(xh, w_wave, preferred_element_type=jnp.float32)
                 + xg_all[min(w, T - 1)])            # (B, 8H)

        # Two full-slab EUP launches instead of 8 quarter-vreg ones.
        sg = jax.nn.sigmoid(g_all)
        th = jnp.tanh(g_all)

        if do_l0:   # PyTorch gate order i, f, g, o in lanes [0:4H)
            c0n = sg[:, H:2 * H] * c0 + sg[:, 0:H] * th[:, 2 * H:3 * H]
        if do_l1:   # same order in lanes [4H:8H)
            c1n = sg[:, 5 * H:6 * H] * c1 + sg[:, 4 * H:5 * H] * th[:, 6 * H:7 * H]

        # One tanh launch for both layers' new cells when both are active.
        if do_l0 and do_l1:
            tc = jnp.tanh(jnp.concatenate([c0n, c1n], axis=-1))
            tc0, tc1 = tc[:, :H], tc[:, H:]
        elif do_l0:
            tc0 = jnp.tanh(c0n)
        else:
            tc1 = jnp.tanh(c1n)

        # Boolean freeze (packed-sequence semantics): one vsel per state.
        if do_l0:
            m0 = masks[w]                            # (B, 1) -> lane broadcast
            h0 = jnp.where(m0, sg[:, 3 * H:4 * H] * tc0, h0)
            c0 = jnp.where(m0, c0n, c0)
        if do_l1:
            m1 = masks[w - 1]
            h1 = jnp.where(m1, sg[:, 7 * H:8 * H] * tc1, h1)
            c1 = jnp.where(m1, c1n, c1)

    # ---- epilogue: fc head on the last layer's final (frozen) hidden state ----
    out_ref[...] = (jnp.dot(h1, wfc_ref[...],
                            preferred_element_type=jnp.float32)
                    + bfc_ref[...])


# ----------------------------------------------------------------------------
# Wrapper
# ----------------------------------------------------------------------------
@jax.jit
def lstm_model_forward(x, lengths, fparams):
    """x: (B, T, I) float32, lengths: (B,) int -> (B, O) float32."""
    B, T, I = x.shape
    O = fparams["wfc"].shape[1]

    # Pad batch to a sublane multiple so every per-wave operand is tile-aligned.
    B_pad = max(8, ((B + 7) // 8) * 8)
    x_pad = jnp.zeros((B_pad, T, I), jnp.float32).at[:B].set(x.astype(jnp.float32))
    len_pad = jnp.zeros((B_pad,), jnp.int32).at[:B].set(lengths.astype(jnp.int32))

    # Time-major, flattened: one big layer-0 input projection in the prologue.
    x2d = jnp.transpose(x_pad, (1, 0, 2)).reshape(T * B_pad, I)

    # Validity mask: step t is "alive" for batch b iff t < lengths[b].
    # (Padded batch rows get length 0 -> stay at the zero initial state.)
    mask = (jnp.arange(T, dtype=jnp.int32)[:, None]
            < len_pad[None, :]).astype(jnp.int32)[:, :, None]      # (T, B_pad, 1)

    vmem = pltpu.MemorySpace.VMEM
    out = pl.pallas_call(
        _lstm_wavefront_kernel,
        out_shape=jax.ShapeDtypeStruct((B_pad, O), jnp.float32),
        in_specs=[pl.BlockSpec(memory_space=vmem)] * 7,
        out_specs=pl.BlockSpec(memory_space=vmem),
    )(x2d, mask,
      fparams["wx_full"], fparams["b_all"], fparams["w_wave"],
      fparams["wfc"], fparams["bfc"])
    return out[:B]


# ----------------------------------------------------------------------------
# Deterministic parameter init (PyTorch-style uniform(-1/sqrt(H), 1/sqrt(H)))
# Natural layout: per-layer gate-fused transposed weights (In, 4H) / (H, 4H).
# ----------------------------------------------------------------------------
def init_params(key, input_size, hidden_size, output_size):
    H, I, O = hidden_size, input_size, output_size
    bound = 1.0 / np.sqrt(H)
    ks = jax.random.split(key, 10)
    u = lambda k, shape: jax.random.uniform(k, shape, jnp.float32, -bound, bound)

    wih0 = u(ks[0], (I, 4 * H))
    whh0 = u(ks[1], (H, 4 * H))
    b0 = u(ks[2], (1, 4 * H)) + u(ks[3], (1, 4 * H))      # b_ih + b_hh
    wih1 = u(ks[4], (H, 4 * H))
    whh1 = u(ks[5], (H, 4 * H))
    b1 = u(ks[6], (1, 4 * H)) + u(ks[7], (1, 4 * H))
    wfc = jax.random.uniform(ks[8], (H, O), jnp.float32, -bound, bound)
    bfc = jax.random.uniform(ks[9], (1, O), jnp.float32, -bound, bound)
    return dict(wih0=wih0, whh0=whh0, b0=b0,
                wih1=wih1, whh1=whh1, b1=b1,
                wfc=wfc, bfc=bfc)


# ----------------------------------------------------------------------------
# One-time fusion of natural params into the kernel's wavefront layout.
# ----------------------------------------------------------------------------
def fuse_params_for_kernel(p):
    I, H4 = p["wih0"].shape
    H = p["whh0"].shape[0]
    f32 = jnp.float32
    # Input projection covering the full 8H gate slab (layer-1 cols = 0),
    # plus the combined bias [b0 | b1].
    wx_full = jnp.concatenate([p["wih0"], jnp.zeros((I, H4), f32)], axis=1)   # (I, 8H)
    b_all = jnp.concatenate([p["b0"], p["b1"]], axis=1)                       # (1, 8H)
    # Block-structured recurrent weight: [[Whh0, Wih1], [0, Whh1]].
    top = jnp.concatenate([p["whh0"], p["wih1"]], axis=1)                     # (H, 8H)
    bot = jnp.concatenate([jnp.zeros((H, H4), f32), p["whh1"]], axis=1)       # (H, 8H)
    w_wave = jnp.concatenate([top, bot], axis=0)                              # (2H, 8H)
    return dict(wx_full=wx_full, b_all=b_all, w_wave=w_wave,
                wfc=p["wfc"], bfc=p["bfc"])


# ----------------------------------------------------------------------------
# Pure-JAX reference (same semantics as packed 2-layer LSTM + fc on h_n[-1])
# ----------------------------------------------------------------------------
def ref_forward(x, lengths, p):
    B, T, _ = x.shape
    H = p["whh0"].shape[0]

    def cell(x_t, h, c, wih, whh, b):
        g = x_t @ wih + h @ whh + b
        i = jax.nn.sigmoid(g[:, :H])
        f = jax.nn.sigmoid(g[:, H:2 * H])
        gg = jnp.tanh(g[:, 2 * H:3 * H])
        o = jax.nn.sigmoid(g[:, 3 * H:])
        c_new = f * c + i * gg
        return o * jnp.tanh(c_new), c_new

    h0 = c0 = h1 = c1 = jnp.zeros((B, H), jnp.float32)
    for t in range(T):
        valid = (lengths > t)[:, None]
        h0n, c0n = cell(x[:, t], h0, c0, p["wih0"], p["whh0"], p["b0"])
        h0 = jnp.where(valid, h0n, h0)
        c0 = jnp.where(valid, c0n, c0)
        h1n, c1n = cell(h0, h1, c1, p["wih1"], p["whh1"], p["b1"])
        h1 = jnp.where(valid, h1n, h1)
        c1 = jnp.where(valid, c1n, c1)
    return h1 @ p["wfc"] + p["bfc"]


if __name__ == "__main__":
    # ModelArgs (synthetic): input_size=16, hidden_size=32, num_layers=2,
    # dropout=0.0, output_size=8.
    # TODO(synk): inter-layer dropout (training-mode only) is not modeled;
    #             zero-length sequences would return fc(0)+b (PyTorch's
    #             pack_padded_sequence rejects length 0).
    B, T, I, H, O = 4, 8, 16, 32, 8

    key = jax.random.PRNGKey(0)
    k_x, k_p = jax.random.split(key)

    x = jax.random.normal(k_x, (B, T, I), jnp.float32)
    lengths = jnp.array([8, 5, 3, 6], dtype=jnp.int32)
    params = init_params(k_p, I, H, O)
    fparams = fuse_params_for_kernel(params)

    out = lstm_model_forward(x, lengths, fparams)
    out = jax.block_until_ready(out)

    ref = ref_forward(x, lengths, params)
    np.testing.assert_allclose(np.asarray(out), np.asarray(ref),
                               rtol=1e-3, atol=1e-3)

    print("KERNEL_OK")
</pallas_src>

<mosaic_0001>
module attributes {stable_mosaic.version = 11 : i64} {
  func.func @_lstm_wavefront_kernel(%arg0: memref<64x16xf32, #tpu.memory_space<vmem>>, %arg1: memref<8x8x1xi32, #tpu.memory_space<vmem>>, %arg2: memref<16x256xf32, #tpu.memory_space<vmem>>, %arg3: memref<1x256xf32, #tpu.memory_space<vmem>>, %arg4: memref<64x256xf32, #tpu.memory_space<vmem>>, %arg5: memref<32x8xf32, #tpu.memory_space<vmem>>, %arg6: memref<1x8xf32, #tpu.memory_space<vmem>>, %arg7: memref<8x8xf32, #tpu.memory_space<vmem>>) attributes {dimension_semantics = [], scalar_prefetch = 0 : i64, scratch_operands = 0 : i64, tpu.core_type = #tpu.core_type<tc>} {
    %c0 = arith.constant 0 : index
    %c0_0 = arith.constant 0 : index
    %0 = vector.load %arg0[%c0, %c0_0] : memref<64x16xf32, #tpu.memory_space<vmem>>, vector<64x16xf32>
    %c0_1 = arith.constant 0 : index
    %c0_2 = arith.constant 0 : index
    %1 = vector.load %arg2[%c0_1, %c0_2] : memref<16x256xf32, #tpu.memory_space<vmem>>, vector<16x256xf32>
    %cst = arith.constant dense<0.000000e+00> : vector<64x256xf32>
    %2 = tpu.matmul %0, %1, %cst {dimension_numbers = #tpu.dot_dimension_numbers<[1], [0], [0], [1], [0, 0, 1, 1], [], []>} : vector<64x16xf32>, vector<16x256xf32>, vector<64x256xf32> -> vector<64x256xf32>
    %c0_3 = arith.constant 0 : index
    %c0_4 = arith.constant 0 : index
    %3 = vector.load %arg3[%c0_3, %c0_4] : memref<1x256xf32, #tpu.memory_space<vmem>>, vector<1x256xf32>
    %4 = vector.broadcast %3 : vector<1x256xf32> to vector<64x256xf32>
    %5 = arith.addf %2, %4 : vector<64x256xf32>
    %6 = vector.shape_cast %5 : vector<64x256xf32> to vector<8x8x256xf32>
    %c0_5 = arith.constant 0 : index
    %c0_6 = arith.constant 0 : index
    %c0_7 = arith.constant 0 : index
    %7 = vector.load %arg1[%c0_5, %c0_6, %c0_7] : memref<8x8x1xi32, #tpu.memory_space<vmem>>, vector<8x8x1xi32>
    %c0_i32 = arith.constant 0 : i32
    %8 = vector.broadcast %c0_i32 : i32 to vector<8x8x1xi32>
    %9 = arith.cmpi ne, %7, %8 : vector<8x8x1xi32>
    %c0_8 = arith.constant 0 : index
    %c0_9 = arith.constant 0 : index
    %10 = vector.load %arg4[%c0_8, %c0_9] : memref<64x256xf32, #tpu.memory_space<vmem>>, vector<64x256xf32>
    %cst_10 = arith.constant 0.000000e+00 : f32
    %11 = vector.broadcast %cst_10 : f32 to vector<8x32xf32>
    %12 = tpu.concatenate %11, %11 in 1 : vector<8x32xf32>, vector<8x32xf32> -> vector<8x64xf32>
    %cst_11 = arith.constant dense<0.000000e+00> : vector<8x256xf32>
    %13 = tpu.matmul %12, %10, %cst_11 {dimension_numbers = #tpu.dot_dimension_numbers<[1], [0], [0], [1], [0, 0, 1, 1], [], []>} : vector<8x64xf32>, vector<64x256xf32>, vector<8x256xf32> -> vector<8x256xf32>
    %14 = vector.extract_strided_slice %6 {offsets = [0, 0, 0], sizes = [1, 8, 256], strides = [1, 1, 1]} : vector<8x8x256xf32> to vector<1x8x256xf32>
    %15 = vector.shape_cast %14 : vector<1x8x256xf32> to vector<8x256xf32>
    %16 = arith.addf %13, %15 : vector<8x256xf32>
    %17 = arith.negf %16 : vector<8x256xf32>
    %18 = math.exp %17 : vector<8x256xf32>
    %cst_12 = arith.constant 1.000000e+00 : f32
    %19 = vector.broadcast %cst_12 : f32 to vector<8x256xf32>
    %20 = arith.addf %19, %18 : vector<8x256xf32>
    %21 = arith.divf %19, %20 : vector<8x256xf32>
    %22 = math.tanh %16 : vector<8x256xf32>
    %23 = vector.extract_strided_slice %21 {offsets = [0, 32], sizes = [8, 32], strides = [1, 1]} : vector<8x256xf32> to vector<8x32xf32>
    %24 = arith.mulf %23, %11 : vector<8x32xf32>
    %25 = vector.extract_strided_slice %21 {offsets = [0, 0], sizes = [8, 32], strides = [1, 1]} : vector<8x256xf32> to vector<8x32xf32>
    %26 = vector.extract_strided_slice %22 {offsets = [0, 64], sizes = [8, 32], strides = [1, 1]} : vector<8x256xf32> to vector<8x32xf32>
    %27 = arith.mulf %25, %26 : vector<8x32xf32>
    %28 = arith.addf %24, %27 : vector<8x32xf32>
    %29 = math.tanh %28 : vector<8x32xf32>
    %30 = vector.extract_strided_slice %9 {offsets = [0, 0, 0], sizes = [1, 8, 1], strides = [1, 1, 1]} : vector<8x8x1xi1> to vector<1x8x1xi1>
    %31 = vector.shape_cast %30 : vector<1x8x1xi1> to vector<8x1xi1>
    %32 = vector.extract_strided_slice %21 {offsets = [0, 96], sizes = [8, 32], strides = [1, 1]} : vector<8x256xf32> to vector<8x32xf32>
    %33 = arith.mulf %32, %29 : vector<8x32xf32>
    %34 = vector.shape_cast %31 : vector<8x1xi1> to vector<8x1xi1>
    %35 = vector.broadcast %34 : vector<8x1xi1> to vector<8x32xi1>
    %36 = arith.select %35, %33, %11 : vector<8x32xi1>, vector<8x32xf32>
    %37 = vector.shape_cast %31 : vector<8x1xi1> to vector<8x1xi1>
    %38 = vector.broadcast %37 : vector<8x1xi1> to vector<8x32xi1>
    %39 = arith.select %38, %28, %11 : vector<8x32xi1>, vector<8x32xf32>
    %40 = tpu.concatenate %36, %11 in 1 : vector<8x32xf32>, vector<8x32xf32> -> vector<8x64xf32>
    %cst_13 = arith.constant dense<0.000000e+00> : vector<8x256xf32>
    %41 = tpu.matmul %40, %10, %cst_13 {dimension_numbers = #tpu.dot_dimension_numbers<[1], [0], [0], [1], [0, 0, 1, 1], [], []>} : vector<8x64xf32>, vector<64x256xf32>, vector<8x256xf32> -> vector<8x256xf32>
    %42 = vector.extract_strided_slice %6 {offsets = [1, 0, 0], sizes = [1, 8, 256], strides = [1, 1, 1]} : vector<8x8x256xf32> to vector<1x8x256xf32>
    %43 = vector.shape_cast %42 : vector<1x8x256xf32> to vector<8x256xf32>
    %44 = arith.addf %41, %43 : vector<8x256xf32>
    %45 = arith.negf %44 : vector<8x256xf32>
    %46 = math.exp %45 : vector<8x256xf32>
    %cst_14 = arith.constant 1.000000e+00 : f32
    %47 = vector.broadcast %cst_14 : f32 to vector<8x256xf32>
    %48 = arith.addf %47, %46 : vector<8x256xf32>
    %49 = arith.divf %47, %48 : vector<8x256xf32>
    %50 = math.tanh %44 : vector<8x256xf32>
    %51 = vector.extract_strided_slice %49 {offsets = [0, 32], sizes = [8, 32], strides = [1, 1]} : vector<8x256xf32> to vector<8x32xf32>
    %52 = arith.mulf %51, %39 : vector<8x32xf32>
    %53 = vector.extract_strided_slice %49 {offsets = [0, 0], sizes = [8, 32], strides = [1, 1]} : vector<8x256xf32> to vector<8x32xf32>
    %54 = vector.extract_strided_slice %50 {offsets = [0, 64], sizes = [8, 32], strides = [1, 1]} : vector<8x256xf32> to vector<8x32xf32>
    %55 = arith.mulf %53, %54 : vector<8x32xf32>
    %56 = arith.addf %52, %55 : vector<8x32xf32>
    %57 = vector.extract_strided_slice %49 {offsets = [0, 160], sizes = [8, 32], strides = [1, 1]} : vector<8x256xf32> to vector<8x32xf32>
    %58 = arith.mulf %57, %11 : vector<8x32xf32>
    %59 = vector.extract_strided_slice %49 {offsets = [0, 128], sizes = [8, 32], strides = [1, 1]} : vector<8x256xf32> to vector<8x32xf32>
    %60 = vector.extract_strided_slice %50 {offsets = [0, 192], sizes = [8, 32], strides = [1, 1]} : vector<8x256xf32> to vector<8x32xf32>
    %61 = arith.mulf %59, %60 : vector<8x32xf32>
    %62 = arith.addf %58, %61 : vector<8x32xf32>
    %63 = tpu.concatenate %56, %62 in 1 : vector<8x32xf32>, vector<8x32xf32> -> vector<8x64xf32>
    %64 = math.tanh %63 : vector<8x64xf32>
    %65 = vector.extract_strided_slice %64 {offsets = [0, 0], sizes = [8, 32], strides = [1, 1]} : vector<8x64xf32> to vector<8x32xf32>
    %66 = vector.extract_strided_slice %64 {offsets = [0, 32], sizes = [8, 32], strides = [1, 1]} : vector<8x64xf32> to vector<8x32xf32>
    %67 = vector.extract_strided_slice %9 {offsets = [1, 0, 0], sizes = [1, 8, 1], strides = [1, 1, 1]} : vector<8x8x1xi1> to vector<1x8x1xi1>
    %68 = vector.shape_cast %67 : vector<1x8x1xi1> to vector<8x1xi1>
    %69 = vector.extract_strided_slice %49 {offsets = [0, 96], sizes = [8, 32], strides = [1, 1]} : vector<8x256xf32> to vector<8x32xf32>
    %70 = arith.mulf %69, %65 : vector<8x32xf32>
    %71 = vector.shape_cast %68 : vector<8x1xi1> to vector<8x1xi1>
    %72 = vector.broadcast %71 : vector<8x1xi1> to vector<8x32xi1>
    %73 = arith.select %72, %70, %36 : vector<8x32xi1>, vector<8x32xf32>
    %74 = vector.shape_cast %68 : vector<8x1xi1> to vector<8x1xi1>
    %75 = vector.broadcast %74 : vector<8x1xi1> to vector<8x32xi1>
    %76 = arith.select %75, %56, %39 : vector<8x32xi1>, vector<8x32xf32>
    %77 = vector.extract_strided_slice %9 {offsets = [0, 0, 0], sizes = [1, 8, 1], strides = [1, 1, 1]} : vector<8x8x1xi1> to vector<1x8x1xi1>
    %78 = vector.shape_cast %77 : vector<1x8x1xi1> to vector<8x1xi1>
    %79 = vector.extract_strided_slice %49 {offsets = [0, 224], sizes = [8, 32], strides = [1, 1]} : vector<8x256xf32> to vector<8x32xf32>
    %80 = arith.mulf %79, %66 : vector<8x32xf32>
    %81 = vector.shape_cast %78 : vector<8x1xi1> to vector<8x1xi1>
    %82 = vector.broadcast %81 : vector<8x1xi1> to vector<8x32xi1>
    %83 = arith.select %82, %80, %11 : vector<8x32xi1>, vector<8x32xf32>
    %84 = vector.shape_cast %78 : vector<8x1xi1> to vector<8x1xi1>
    %85 = vector.broadcast %84 : vector<8x1xi1> to vector<8x32xi1>
    %86 = arith.select %85, %62, %11 : vector<8x32xi1>, vector<8x32xf32>
    %87 = tpu.concatenate %73, %83 in 1 : vector<8x32xf32>, vector<8x32xf32> -> vector<8x64xf32>
    %cst_15 = arith.constant dense<0.000000e+00> : vector<8x256xf32>
    %88 = tpu.matmul %87, %10, %cst_15 {dimension_numbers = #tpu.dot_dimension_numbers<[1], [0], [0], [1], [0, 0, 1, 1], [], []>} : vector<8x64xf32>, vector<64x256xf32>, vector<8x256xf32> -> vector<8x256xf32>
    %89 = vector.extract_strided_slice %6 {offsets = [2, 0, 0], sizes = [1, 8, 256], strides = [1, 1, 1]} : vector<8x8x256xf32> to vector<1x8x256xf32>
    %90 = vector.shape_cast %89 : vector<1x8x256xf32> to vector<8x256xf32>
    %91 = arith.addf %88, %90 : vector<8x256xf32>
    %92 = arith.negf %91 : vector<8x256xf32>
    %93 = math.exp %92 : vector<8x256xf32>
    %cst_16 = arith.constant 1.000000e+00 : f32
    %94 = vector.broadcast %cst_16 : f32 to vector<8x256xf32>
    %95 = arith.addf %94, %93 : vector<8x256xf32>
    %96 = arith.divf %94, %95 : vector<8x256xf32>
    %97 = math.tanh %91 : vector<8x256xf32>
    %98 = vector.extract_strided_slice %96 {offsets = [0, 32], sizes = [8, 32], strides = [1, 1]} : vector<8x256xf32> to vector<8x32xf32>
    %99 = arith.mulf %98, %76 : vector<8x32xf32>
    %100 = vector.extract_strided_slice %96 {offsets = [0, 0], sizes = [8, 32], strides = [1, 1]} : vector<8x256xf32> to vector<8x32xf32>
    %101 = vector.extract_strided_slice %97 {offsets = [0, 64], sizes = [8, 32], strides = [1, 1]} : vector<8x256xf32> to vector<8x32xf32>
    %102 = arith.mulf %100, %101 : vector<8x32xf32>
    %103 = arith.addf %99, %102 : vector<8x32xf32>
    %104 = vector.extract_strided_slice %96 {offsets = [0, 160], sizes = [8, 32], strides = [1, 1]} : vector<8x256xf32> to vector<8x32xf32>
    %105 = arith.mulf %104, %86 : vector<8x32xf32>
    %106 = vector.extract_strided_slice %96 {offsets = [0, 128], sizes = [8, 32], strides = [1, 1]} : vector<8x256xf32> to vector<8x32xf32>
    %107 = vector.extract_strided_slice %97 {offsets = [0, 192], sizes = [8, 32], strides = [1, 1]} : vector<8x256xf32> to vector<8x32xf32>
    %108 = arith.mulf %106, %107 : vector<8x32xf32>
    %109 = arith.addf %105, %108 : vector<8x32xf32>
    %110 = tpu.concatenate %103, %109 in 1 : vector<8x32xf32>, vector<8x32xf32> -> vector<8x64xf32>
    %111 = math.tanh %110 : vector<8x64xf32>
    %112 = vector.extract_strided_slice %111 {offsets = [0, 0], sizes = [8, 32], strides = [1, 1]} : vector<8x64xf32> to vector<8x32xf32>
    %113 = vector.extract_strided_slice %111 {offsets = [0, 32], sizes = [8, 32], strides = [1, 1]} : vector<8x64xf32> to vector<8x32xf32>
    %114 = vector.extract_strided_slice %9 {offsets = [2, 0, 0], sizes = [1, 8, 1], strides = [1, 1, 1]} : vector<8x8x1xi1> to vector<1x8x1xi1>
    %115 = vector.shape_cast %114 : vector<1x8x1xi1> to vector<8x1xi1>
    %116 = vector.extract_strided_slice %96 {offsets = [0, 96], sizes = [8, 32], strides = [1, 1]} : vector<8x256xf32> to vector<8x32xf32>
    %117 = arith.mulf %116, %112 : vector<8x32xf32>
    %118 = vector.shape_cast %115 : vector<8x1xi1> to vector<8x1xi1>
    %119 = vector.broadcast %118 : vector<8x1xi1> to vector<8x32xi1>
    %120 = arith.select %119, %117, %73 : vector<8x32xi1>, vector<8x32xf32>
    %121 = vector.shape_cast %115 : vector<8x1xi1> to vector<8x1xi1>
    %122 = vector.broadcast %121 : vector<8x1xi1> to vector<8x32xi1>
    %123 = arith.select %122, %103, %76 : vector<8x32xi1>, vector<8x32xf32>
    %124 = vector.extract_strided_slice %9 {offsets = [1, 0, 0], sizes = [1, 8, 1], strides = [1, 1, 1]} : vector<8x8x1xi1> to vector<1x8x1xi1>
    %125 = vector.shape_cast %124 : vector<1x8x1xi1> to vector<8x1xi1>
    %126 = vector.extract_strided_slice %96 {offsets = [0, 224], sizes = [8, 32], strides = [1, 1]} : vector<8x256xf32> to vector<8x32xf32>
    %127 = arith.mulf %126, %113 : vector<8x32xf32>
    %128 = vector.shape_cast %125 : vector<8x1xi1> to vector<8x1xi1>
    %129 = vector.broadcast %128 : vector<8x1xi1> to vector<8x32xi1>
    %130 = arith.select %129, %127, %83 : vector<8x32xi1>, vector<8x32xf32>
    %131 = vector.shape_cast %125 : vector<8x1xi1> to vector<8x1xi1>
    %132 = vector.broadcast %131 : vector<8x1xi1> to vector<8x32xi1>
    %133 = arith.select %132, %109, %86 : vector<8x32xi1>, vector<8x32xf32>
    %134 = tpu.concatenate %120, %130 in 1 : vector<8x32xf32>, vector<8x32xf32> -> vector<8x64xf32>
    %cst_17 = arith.constant dense<0.000000e+00> : vector<8x256xf32>
    %135 = tpu.matmul %134, %10, %cst_17 {dimension_numbers = #tpu.dot_dimension_numbers<[1], [0], [0], [1], [0, 0, 1, 1], [], []>} : vector<8x64xf32>, vector<64x256xf32>, vector<8x256xf32> -> vector<8x256xf32>
    %136 = vector.extract_strided_slice %6 {offsets = [3, 0, 0], sizes = [1, 8, 256], strides = [1, 1, 1]} : vector<8x8x256xf32> to vector<1x8x256xf32>
    %137 = vector.shape_cast %136 : vector<1x8x256xf32> to vector<8x256xf32>
    %138 = arith.addf %135, %137 : vector<8x256xf32>
    %139 = arith.negf %138 : vector<8x256xf32>
    %140 = math.exp %139 : vector<8x256xf32>
    %cst_18 = arith.constant 1.000000e+00 : f32
    %141 = vector.broadcast %cst_18 : f32 to vector<8x256xf32>
    %142 = arith.addf %141, %140 : vector<8x256xf32>
    %143 = arith.divf %141, %142 : vector<8x256xf32>
    %144 = math.tanh %138 : vector<8x256xf32>
    %145 = vector.extract_strided_slice %143 {offsets = [0, 32], sizes = [8, 32], strides = [1, 1]} : vector<8x256xf32> to vector<8x32xf32>
    %146 = arith.mulf %145, %123 : vector<8x32xf32>
    %147 = vector.extract_strided_slice %143 {offsets = [0, 0], sizes = [8, 32], strides = [1, 1]} : vector<8x256xf32> to vector<8x32xf32>
    %148 = vector.extract_strided_slice %144 {offsets = [0, 64], sizes = [8, 32], strides = [1, 1]} : vector<8x256xf32> to vector<8x32xf32>
    %149 = arith.mulf %147, %148 : vector<8x32xf32>
    %150 = arith.addf %146, %149 : vector<8x32xf32>
    %151 = vector.extract_strided_slice %143 {offsets = [0, 160], sizes = [8, 32], strides = [1, 1]} : vector<8x256xf32> to vector<8x32xf32>
    %152 = arith.mulf %151, %133 : vector<8x32xf32>
    %153 = vector.extract_strided_slice %143 {offsets = [0, 128], sizes = [8, 32], strides = [1, 1]} : vector<8x256xf32> to vector<8x32xf32>
    %154 = vector.extract_strided_slice %144 {offsets = [0, 192], sizes = [8, 32], strides = [1, 1]} : vector<8x256xf32> to vector<8x32xf32>
    %155 = arith.mulf %153, %154 : vector<8x32xf32>
    %156 = arith.addf %152, %155 : vector<8x32xf32>
    %157 = tpu.concatenate %150, %156 in 1 : vector<8x32xf32>, vector<8x32xf32> -> vector<8x64xf32>
    %158 = math.tanh %157 : vector<8x64xf32>
    %159 = vector.extract_strided_slice %158 {offsets = [0, 0], sizes = [8, 32], strides = [1, 1]} : vector<8x64xf32> to vector<8x32xf32>
    %160 = vector.extract_strided_slice %158 {offsets = [0, 32], sizes = [8, 32], strides = [1, 1]} : vector<8x64xf32> to vector<8x32xf32>
    %161 = vector.extract_strided_slice %9 {offsets = [3, 0, 0], sizes = [1, 8, 1], strides = [1, 1, 1]} : vector<8x8x1xi1> to vector<1x8x1xi1>
    %162 = vector.shape_cast %161 : vector<1x8x1xi1> to vector<8x1xi1>
    %163 = vector.extract_strided_slice %143 {offsets = [0, 96], sizes = [8, 32], strides = [1, 1]} : vector<8x256xf32> to vector<8x32xf32>
    %164 = arith.mulf %163, %159 : vector<8x32xf32>
    %165 = vector.shape_cast %162 : vector<8x1xi1> to vector<8x1xi1>
    %166 = vector.broadcast %165 : vector<8x1xi1> to vector<8x32xi1>
    %167 = arith.select %166, %164, %120 : vector<8x32xi1>, vector<8x32xf32>
    %168 = vector.shape_cast %162 : vector<8x1xi1> to vector<8x1xi1>
    %169 = vector.broadcast %168 : vector<8x1xi1> to vector<8x32xi1>
    %170 = arith.select %169, %150, %123 : vector<8x32xi1>, vector<8x32xf32>
    %171 = vector.extract_strided_slice %9 {offsets = [2, 0, 0], sizes = [1, 8, 1], strides = [1, 1, 1]} : vector<8x8x1xi1> to vector<1x8x1xi1>
    %172 = vector.shape_cast %171 : vector<1x8x1xi1> to vector<8x1xi1>
    %173 = vector.extract_strided_slice %143 {offsets = [0, 224], sizes = [8, 32], strides = [1, 1]} : vector<8x256xf32> to vector<8x32xf32>
    %174 = arith.mulf %173, %160 : vector<8x32xf32>
    %175 = vector.shape_cast %172 : vector<8x1xi1> to vector<8x1xi1>
    %176 = vector.broadcast %175 : vector<8x1xi1> to vector<8x32xi1>
    %177 = arith.select %176, %174, %130 : vector<8x32xi1>, vector<8x32xf32>
    %178 = vector.shape_cast %172 : vector<8x1xi1> to vector<8x1xi1>
    %179 = vector.broadcast %178 : vector<8x1xi1> to vector<8x32xi1>
    %180 = arith.select %179, %156, %133 : vector<8x32xi1>, vector<8x32xf32>
    %181 = tpu.concatenate %167, %177 in 1 : vector<8x32xf32>, vector<8x32xf32> -> vector<8x64xf32>
    %cst_19 = arith.constant dense<0.000000e+00> : vector<8x256xf32>
    %182 = tpu.matmul %181, %10, %cst_19 {dimension_numbers = #tpu.dot_dimension_numbers<[1], [0], [0], [1], [0, 0, 1, 1], [], []>} : vector<8x64xf32>, vector<64x256xf32>, vector<8x256xf32> -> vector<8x256xf32>
    %183 = vector.extract_strided_slice %6 {offsets = [4, 0, 0], sizes = [1, 8, 256], strides = [1, 1, 1]} : vector<8x8x256xf32> to vector<1x8x256xf32>
    %184 = vector.shape_cast %183 : vector<1x8x256xf32> to vector<8x256xf32>
    %185 = arith.addf %182, %184 : vector<8x256xf32>
    %186 = arith.negf %185 : vector<8x256xf32>
    %187 = math.exp %186 : vector<8x256xf32>
    %cst_20 = arith.constant 1.000000e+00 : f32
    %188 = vector.broadcast %cst_20 : f32 to vector<8x256xf32>
    %189 = arith.addf %188, %187 : vector<8x256xf32>
    %190 = arith.divf %188, %189 : vector<8x256xf32>
    %191 = math.tanh %185 : vector<8x256xf32>
    %192 = vector.extract_strided_slice %190 {offsets = [0, 32], sizes = [8, 32], strides = [1, 1]} : vector<8x256xf32> to vector<8x32xf32>
    %193 = arith.mulf %192, %170 : vector<8x32xf32>
    %194 = vector.extract_strided_slice %190 {offsets = [0, 0], sizes = [8, 32], strides = [1, 1]} : vector<8x256xf32> to vector<8x32xf32>
    %195 = vector.extract_strided_slice %191 {offsets = [0, 64], sizes = [8, 32], strides = [1, 1]} : vector<8x256xf32> to vector<8x32xf32>
    %196 = arith.mulf %194, %195 : vector<8x32xf32>
    %197 = arith.addf %193, %196 : vector<8x32xf32>
    %198 = vector.extract_strided_slice %190 {offsets = [0, 160], sizes = [8, 32], strides = [1, 1]} : vector<8x256xf32> to vector<8x32xf32>
    %199 = arith.mulf %198, %180 : vector<8x32xf32>
    %200 = vector.extract_strided_slice %190 {offsets = [0, 128], sizes = [8, 32], strides = [1, 1]} : vector<8x256xf32> to vector<8x32xf32>
    %201 = vector.extract_strided_slice %191 {offsets = [0, 192], sizes = [8, 32], strides = [1, 1]} : vector<8x256xf32> to vector<8x32xf32>
    %202 = arith.mulf %200, %201 : vector<8x32xf32>
    %203 = arith.addf %199, %202 : vector<8x32xf32>
    %204 = tpu.concatenate %197, %203 in 1 : vector<8x32xf32>, vector<8x32xf32> -> vector<8x64xf32>
    %205 = math.tanh %204 : vector<8x64xf32>
    %206 = vector.extract_strided_slice %205 {offsets = [0, 0], sizes = [8, 32], strides = [1, 1]} : vector<8x64xf32> to vector<8x32xf32>
    %207 = vector.extract_strided_slice %205 {offsets = [0, 32], sizes = [8, 32], strides = [1, 1]} : vector<8x64xf32> to vector<8x32xf32>
    %208 = vector.extract_strided_slice %9 {offsets = [4, 0, 0], sizes = [1, 8, 1], strides = [1, 1, 1]} : vector<8x8x1xi1> to vector<1x8x1xi1>
    %209 = vector.shape_cast %208 : vector<1x8x1xi1> to vector<8x1xi1>
    %210 = vector.extract_strided_slice %190 {offsets = [0, 96], sizes = [8, 32], strides = [1, 1]} : vector<8x256xf32> to vector<8x32xf32>
    %211 = arith.mulf %210, %206 : vector<8x32xf32>
    %212 = vector.shape_cast %209 : vector<8x1xi1> to vector<8x1xi1>
    %213 = vector.broadcast %212 : vector<8x1xi1> to vector<8x32xi1>
    %214 = arith.select %213, %211, %167 : vector<8x32xi1>, vector<8x32xf32>
    %215 = vector.shape_cast %209 : vector<8x1xi1> to vector<8x1xi1>
    %216 = vector.broadcast %215 : vector<8x1xi1> to vector<8x32xi1>
    %217 = arith.select %216, %197, %170 : vector<8x32xi1>, vector<8x32xf32>
    %218 = vector.extract_strided_slice %9 {offsets = [3, 0, 0], sizes = [1, 8, 1], strides = [1, 1, 1]} : vector<8x8x1xi1> to vector<1x8x1xi1>
    %219 = vector.shape_cast %218 : vector<1x8x1xi1> to vector<8x1xi1>
    %220 = vector.extract_strided_slice %190 {offsets = [0, 224], sizes = [8, 32], strides = [1, 1]} : vector<8x256xf32> to vector<8x32xf32>
    %221 = arith.mulf %220, %207 : vector<8x32xf32>
    %222 = vector.shape_cast %219 : vector<8x1xi1> to vector<8x1xi1>
    %223 = vector.broadcast %222 : vector<8x1xi1> to vector<8x32xi1>
    %224 = arith.select %223, %221, %177 : vector<8x32xi1>, vector<8x32xf32>
    %225 = vector.shape_cast %219 : vector<8x1xi1> to vector<8x1xi1>
    %226 = vector.broadcast %225 : vector<8x1xi1> to vector<8x32xi1>
    %227 = arith.select %226, %203, %180 : vector<8x32xi1>, vector<8x32xf32>
    %228 = tpu.concatenate %214, %224 in 1 : vector<8x32xf32>, vector<8x32xf32> -> vector<8x64xf32>
    %cst_21 = arith.constant dense<0.000000e+00> : vector<8x256xf32>
    %229 = tpu.matmul %228, %10, %cst_21 {dimension_numbers = #tpu.dot_dimension_numbers<[1], [0], [0], [1], [0, 0, 1, 1], [], []>} : vector<8x64xf32>, vector<64x256xf32>, vector<8x256xf32> -> vector<8x256xf32>
    %230 = vector.extract_strided_slice %6 {offsets = [5, 0, 0], sizes = [1, 8, 256], strides = [1, 1, 1]} : vector<8x8x256xf32> to vector<1x8x256xf32>
    %231 = vector.shape_cast %230 : vector<1x8x256xf32> to vector<8x256xf32>
    %232 = arith.addf %229, %231 : vector<8x256xf32>
    %233 = arith.negf %232 : vector<8x256xf32>
    %234 = math.exp %233 : vector<8x256xf32>
    %cst_22 = arith.constant 1.000000e+00 : f32
    %235 = vector.broadcast %cst_22 : f32 to vector<8x256xf32>
    %236 = arith.addf %235, %234 : vector<8x256xf32>
    %237 = arith.divf %235, %236 : vector<8x256xf32>
    %238 = math.tanh %232 : vector<8x256xf32>
    %239 = vector.extract_strided_slice %237 {offsets = [0, 32], sizes = [8, 32], strides = [1, 1]} : vector<8x256xf32> to vector<8x32xf32>
    %240 = arith.mulf %239, %217 : vector<8x32xf32>
    %241 = vector.extract_strided_slice %237 {offsets = [0, 0], sizes = [8, 32], strides = [1, 1]} : vector<8x256xf32> to vector<8x32xf32>
    %242 = vector.extract_strided_slice %238 {offsets = [0, 64], sizes = [8, 32], strides = [1, 1]} : vector<8x256xf32> to vector<8x32xf32>
    %243 = arith.mulf %241, %242 : vector<8x32xf32>
    %244 = arith.addf %240, %243 : vector<8x32xf32>
    %245 = vector.extract_strided_slice %237 {offsets = [0, 160], sizes = [8, 32], strides = [1, 1]} : vector<8x256xf32> to vector<8x32xf32>
    %246 = arith.mulf %245, %227 : vector<8x32xf32>
    %247 = vector.extract_strided_slice %237 {offsets = [0, 128], sizes = [8, 32], strides = [1, 1]} : vector<8x256xf32> to vector<8x32xf32>
    %248 = vector.extract_strided_slice %238 {offsets = [0, 192], sizes = [8, 32], strides = [1, 1]} : vector<8x256xf32> to vector<8x32xf32>
    %249 = arith.mulf %247, %248 : vector<8x32xf32>
    %250 = arith.addf %246, %249 : vector<8x32xf32>
    %251 = tpu.concatenate %244, %250 in 1 : vector<8x32xf32>, vector<8x32xf32> -> vector<8x64xf32>
    %252 = math.tanh %251 : vector<8x64xf32>
    %253 = vector.extract_strided_slice %252 {offsets = [0, 0], sizes = [8, 32], strides = [1, 1]} : vector<8x64xf32> to vector<8x32xf32>
    %254 = vector.extract_strided_slice %252 {offsets = [0, 32], sizes = [8, 32], strides = [1, 1]} : vector<8x64xf32> to vector<8x32xf32>
    %255 = vector.extract_strided_slice %9 {offsets = [5, 0, 0], sizes = [1, 8, 1], strides = [1, 1, 1]} : vector<8x8x1xi1> to vector<1x8x1xi1>
    %256 = vector.shape_cast %255 : vector<1x8x1xi1> to vector<8x1xi1>
    %257 = vector.extract_strided_slice %237 {offsets = [0, 96], sizes = [8, 32], strides = [1, 1]} : vector<8x256xf32> to vector<8x32xf32>
    %258 = arith.mulf %257, %253 : vector<8x32xf32>
    %259 = vector.shape_cast %256 : vector<8x1xi1> to vector<8x1xi1>
    %260 = vector.broadcast %259 : vector<8x1xi1> to vector<8x32xi1>
    %261 = arith.select %260, %258, %214 : vector<8x32xi1>, vector<8x32xf32>
    %262 = vector.shape_cast %256 : vector<8x1xi1> to vector<8x1xi1>
    %263 = vector.broadcast %262 : vector<8x1xi1> to vector<8x32xi1>
    %264 = arith.select %263, %244, %217 : vector<8x32xi1>, vector<8x32xf32>
    %265 = vector.extract_strided_slice %9 {offsets = [4, 0, 0], sizes = [1, 8, 1], strides = [1, 1, 1]} : vector<8x8x1xi1> to vector<1x8x1xi1>
    %266 = vector.shape_cast %265 : vector<1x8x1xi1> to vector<8x1xi1>
    %267 = vector.extract_strided_slice %237 {offsets = [0, 224], sizes = [8, 32], strides = [1, 1]} : vector<8x256xf32> to vector<8x32xf32>
    %268 = arith.mulf %267, %254 : vector<8x32xf32>
    %269 = vector.shape_cast %266 : vector<8x1xi1> to vector<8x1xi1>
    %270 = vector.broadcast %269 : vector<8x1xi1> to vector<8x32xi1>
    %271 = arith.select %270, %268, %224 : vector<8x32xi1>, vector<8x32xf32>
    %272 = vector.shape_cast %266 : vector<8x1xi1> to vector<8x1xi1>
    %273 = vector.broadcast %272 : vector<8x1xi1> to vector<8x32xi1>
    %274 = arith.select %273, %250, %227 : vector<8x32xi1>, vector<8x32xf32>
    %275 = tpu.concatenate %261, %271 in 1 : vector<8x32xf32>, vector<8x32xf32> -> vector<8x64xf32>
    %cst_23 = arith.constant dense<0.000000e+00> : vector<8x256xf32>
    %276 = tpu.matmul %275, %10, %cst_23 {dimension_numbers = #tpu.dot_dimension_numbers<[1], [0], [0], [1], [0, 0, 1, 1], [], []>} : vector<8x64xf32>, vector<64x256xf32>, vector<8x256xf32> -> vector<8x256xf32>
    %277 = vector.extract_strided_slice %6 {offsets = [6, 0, 0], sizes = [1, 8, 256], strides = [1, 1, 1]} : vector<8x8x256xf32> to vector<1x8x256xf32>
    %278 = vector.shape_cast %277 : vector<1x8x256xf32> to vector<8x256xf32>
    %279 = arith.addf %276, %278 : vector<8x256xf32>
    %280 = arith.negf %279 : vector<8x256xf32>
    %281 = math.exp %280 : vector<8x256xf32>
    %cst_24 = arith.constant 1.000000e+00 : f32
    %282 = vector.broadcast %cst_24 : f32 to vector<8x256xf32>
    %283 = arith.addf %282, %281 : vector<8x256xf32>
    %284 = arith.divf %282, %283 : vector<8x256xf32>
    %285 = math.tanh %279 : vector<8x256xf32>
    %286 = vector.extract_strided_slice %284 {offsets = [0, 32], sizes = [8, 32], strides = [1, 1]} : vector<8x256xf32> to vector<8x32xf32>
    %287 = arith.mulf %286, %264 : vector<8x32xf32>
    %288 = vector.extract_strided_slice %284 {offsets = [0, 0], sizes = [8, 32], strides = [1, 1]} : vector<8x256xf32> to vector<8x32xf32>
    %289 = vector.extract_strided_slice %285 {offsets = [0, 64], sizes = [8, 32], strides = [1, 1]} : vector<8x256xf32> to vector<8x32xf32>
    %290 = arith.mulf %288, %289 : vector<8x32xf32>
    %291 = arith.addf %287, %290 : vector<8x32xf32>
    %292 = vector.extract_strided_slice %284 {offsets = [0, 160], sizes = [8, 32], strides = [1, 1]} : vector<8x256xf32> to vector<8x32xf32>
    %293 = arith.mulf %292, %274 : vector<8x32xf32>
    %294 = vector.extract_strided_slice %284 {offsets = [0, 128], sizes = [8, 32], strides = [1, 1]} : vector<8x256xf32> to vector<8x32xf32>
    %295 = vector.extract_strided_slice %285 {offsets = [0, 192], sizes = [8, 32], strides = [1, 1]} : vector<8x256xf32> to vector<8x32xf32>
    %296 = arith.mulf %294, %295 : vector<8x32xf32>
    %297 = arith.addf %293, %296 : vector<8x32xf32>
    %298 = tpu.concatenate %291, %297 in 1 : vector<8x32xf32>, vector<8x32xf32> -> vector<8x64xf32>
    %299 = math.tanh %298 : vector<8x64xf32>
    %300 = vector.extract_strided_slice %299 {offsets = [0, 0], sizes = [8, 32], strides = [1, 1]} : vector<8x64xf32> to vector<8x32xf32>
    %301 = vector.extract_strided_slice %299 {offsets = [0, 32], sizes = [8, 32], strides = [1, 1]} : vector<8x64xf32> to vector<8x32xf32>
    %302 = vector.extract_strided_slice %9 {offsets = [6, 0, 0], sizes = [1, 8, 1], strides = [1, 1, 1]} : vector<8x8x1xi1> to vector<1x8x1xi1>
    %303 = vector.shape_cast %302 : vector<1x8x1xi1> to vector<8x1xi1>
    %304 = vector.extract_strided_slice %284 {offsets = [0, 96], sizes = [8, 32], strides = [1, 1]} : vector<8x256xf32> to vector<8x32xf32>
    %305 = arith.mulf %304, %300 : vector<8x32xf32>
    %306 = vector.shape_cast %303 : vector<8x1xi1> to vector<8x1xi1>
    %307 = vector.broadcast %306 : vector<8x1xi1> to vector<8x32xi1>
    %308 = arith.select %307, %305, %261 : vector<8x32xi1>, vector<8x32xf32>
    %309 = vector.shape_cast %303 : vector<8x1xi1> to vector<8x1xi1>
    %310 = vector.broadcast %309 : vector<8x1xi1> to vector<8x32xi1>
    %311 = arith.select %310, %291, %264 : vector<8x32xi1>, vector<8x32xf32>
    %312 = vector.extract_strided_slice %9 {offsets = [5, 0, 0], sizes = [1, 8, 1], strides = [1, 1, 1]} : vector<8x8x1xi1> to vector<1x8x1xi1>
    %313 = vector.shape_cast %312 : vector<1x8x1xi1> to vector<8x1xi1>
    %314 = vector.extract_strided_slice %284 {offsets = [0, 224], sizes = [8, 32], strides = [1, 1]} : vector<8x256xf32> to vector<8x32xf32>
    %315 = arith.mulf %314, %301 : vector<8x32xf32>
    %316 = vector.shape_cast %313 : vector<8x1xi1> to vector<8x1xi1>
    %317 = vector.broadcast %316 : vector<8x1xi1> to vector<8x32xi1>
    %318 = arith.select %317, %315, %271 : vector<8x32xi1>, vector<8x32xf32>
    %319 = vector.shape_cast %313 : vector<8x1xi1> to vector<8x1xi1>
    %320 = vector.broadcast %319 : vector<8x1xi1> to vector<8x32xi1>
    %321 = arith.select %320, %297, %274 : vector<8x32xi1>, vector<8x32xf32>
    %322 = tpu.concatenate %308, %318 in 1 : vector<8x32xf32>, vector<8x32xf32> -> vector<8x64xf32>
    %cst_25 = arith.constant dense<0.000000e+00> : vector<8x256xf32>
    %323 = tpu.matmul %322, %10, %cst_25 {dimension_numbers = #tpu.dot_dimension_numbers<[1], [0], [0], [1], [0, 0, 1, 1], [], []>} : vector<8x64xf32>, vector<64x256xf32>, vector<8x256xf32> -> vector<8x256xf32>
    %324 = vector.extract_strided_slice %6 {offsets = [7, 0, 0], sizes = [1, 8, 256], strides = [1, 1, 1]} : vector<8x8x256xf32> to vector<1x8x256xf32>
    %325 = vector.shape_cast %324 : vector<1x8x256xf32> to vector<8x256xf32>
    %326 = arith.addf %323, %325 : vector<8x256xf32>
    %327 = arith.negf %326 : vector<8x256xf32>
    %328 = math.exp %327 : vector<8x256xf32>
    %cst_26 = arith.constant 1.000000e+00 : f32
    %329 = vector.broadcast %cst_26 : f32 to vector<8x256xf32>
    %330 = arith.addf %329, %328 : vector<8x256xf32>
    %331 = arith.divf %329, %330 : vector<8x256xf32>
    %332 = math.tanh %326 : vector<8x256xf32>
    %333 = vector.extract_strided_slice %331 {offsets = [0, 32], sizes = [8, 32], strides = [1, 1]} : vector<8x256xf32> to vector<8x32xf32>
    %334 = arith.mulf %333, %311 : vector<8x32xf32>
    %335 = vector.extract_strided_slice %331 {offsets = [0, 0], sizes = [8, 32], strides = [1, 1]} : vector<8x256xf32> to vector<8x32xf32>
    %336 = vector.extract_strided_slice %332 {offsets = [0, 64], sizes = [8, 32], strides = [1, 1]} : vector<8x256xf32> to vector<8x32xf32>
    %337 = arith.mulf %335, %336 : vector<8x32xf32>
    %338 = arith.addf %334, %337 : vector<8x32xf32>
    %339 = vector.extract_strided_slice %331 {offsets = [0, 160], sizes = [8, 32], strides = [1, 1]} : vector<8x256xf32> to vector<8x32xf32>
    %340 = arith.mulf %339, %321 : vector<8x32xf32>
    %341 = vector.extract_strided_slice %331 {offsets = [0, 128], sizes = [8, 32], strides = [1, 1]} : vector<8x256xf32> to vector<8x32xf32>
    %342 = vector.extract_strided_slice %332 {offsets = [0, 192], sizes = [8, 32], strides = [1, 1]} : vector<8x256xf32> to vector<8x32xf32>
    %343 = arith.mulf %341, %342 : vector<8x32xf32>
    %344 = arith.addf %340, %343 : vector<8x32xf32>
    %345 = tpu.concatenate %338, %344 in 1 : vector<8x32xf32>, vector<8x32xf32> -> vector<8x64xf32>
    %346 = math.tanh %345 : vector<8x64xf32>
    %347 = vector.extract_strided_slice %346 {offsets = [0, 0], sizes = [8, 32], strides = [1, 1]} : vector<8x64xf32> to vector<8x32xf32>
    %348 = vector.extract_strided_slice %346 {offsets = [0, 32], sizes = [8, 32], strides = [1, 1]} : vector<8x64xf32> to vector<8x32xf32>
    %349 = vector.extract_strided_slice %9 {offsets = [7, 0, 0], sizes = [1, 8, 1], strides = [1, 1, 1]} : vector<8x8x1xi1> to vector<1x8x1xi1>
    %350 = vector.shape_cast %349 : vector<1x8x1xi1> to vector<8x1xi1>
    %351 = vector.extract_strided_slice %331 {offsets = [0, 96], sizes = [8, 32], strides = [1, 1]} : vector<8x256xf32> to vector<8x32xf32>
    %352 = arith.mulf %351, %347 : vector<8x32xf32>
    %353 = vector.shape_cast %350 : vector<8x1xi1> to vector<8x1xi1>
    %354 = vector.broadcast %353 : vector<8x1xi1> to vector<8x32xi1>
    %355 = arith.select %354, %352, %308 : vector<8x32xi1>, vector<8x32xf32>
    %356 = vector.extract_strided_slice %9 {offsets = [6, 0, 0], sizes = [1, 8, 1], strides = [1, 1, 1]} : vector<8x8x1xi1> to vector<1x8x1xi1>
    %357 = vector.shape_cast %356 : vector<1x8x1xi1> to vector<8x1xi1>
    %358 = vector.extract_strided_slice %331 {offsets = [0, 224], sizes = [8, 32], strides = [1, 1]} : vector<8x256xf32> to vector<8x32xf32>
    %359 = arith.mulf %358, %348 : vector<8x32xf32>
    %360 = vector.shape_cast %357 : vector<8x1xi1> to vector<8x1xi1>
    %361 = vector.broadcast %360 : vector<8x1xi1> to vector<8x32xi1>
    %362 = arith.select %361, %359, %318 : vector<8x32xi1>, vector<8x32xf32>
    %363 = vector.shape_cast %357 : vector<8x1xi1> to vector<8x1xi1>
    %364 = vector.broadcast %363 : vector<8x1xi1> to vector<8x32xi1>
    %365 = arith.select %364, %344, %321 : vector<8x32xi1>, vector<8x32xf32>
    %366 = tpu.concatenate %355, %362 in 1 : vector<8x32xf32>, vector<8x32xf32> -> vector<8x64xf32>
    %cst_27 = arith.constant dense<0.000000e+00> : vector<8x256xf32>
    %367 = tpu.matmul %366, %10, %cst_27 {dimension_numbers = #tpu.dot_dimension_numbers<[1], [0], [0], [1], [0, 0, 1, 1], [], []>} : vector<8x64xf32>, vector<64x256xf32>, vector<8x256xf32> -> vector<8x256xf32>
    %368 = vector.extract_strided_slice %6 {offsets = [7, 0, 0], sizes = [1, 8, 256], strides = [1, 1, 1]} : vector<8x8x256xf32> to vector<1x8x256xf32>
    %369 = vector.shape_cast %368 : vector<1x8x256xf32> to vector<8x256xf32>
    %370 = arith.addf %367, %369 : vector<8x256xf32>
    %371 = arith.negf %370 : vector<8x256xf32>
    %372 = math.exp %371 : vector<8x256xf32>
    %cst_28 = arith.constant 1.000000e+00 : f32
    %373 = vector.broadcast %cst_28 : f32 to vector<8x256xf32>
    %374 = arith.addf %373, %372 : vector<8x256xf32>
    %375 = arith.divf %373, %374 : vector<8x256xf32>
    %376 = math.tanh %370 : vector<8x256xf32>
    %377 = vector.extract_strided_slice %375 {offsets = [0, 160], sizes = [8, 32], strides = [1, 1]} : vector<8x256xf32> to vector<8x32xf32>
    %378 = arith.mulf %377, %365 : vector<8x32xf32>
    %379 = vector.extract_strided_slice %375 {offsets = [0, 128], sizes = [8, 32], strides = [1, 1]} : vector<8x256xf32> to vector<8x32xf32>
    %380 = vector.extract_strided_slice %376 {offsets = [0, 192], sizes = [8, 32], strides = [1, 1]} : vector<8x256xf32> to vector<8x32xf32>
    %381 = arith.mulf %379, %380 : vector<8x32xf32>
    %382 = arith.addf %378, %381 : vector<8x32xf32>
    %383 = math.tanh %382 : vector<8x32xf32>
    %384 = vector.extract_strided_slice %9 {offsets = [7, 0, 0], sizes = [1, 8, 1], strides = [1, 1, 1]} : vector<8x8x1xi1> to vector<1x8x1xi1>
    %385 = vector.shape_cast %384 : vector<1x8x1xi1> to vector<8x1xi1>
    %386 = vector.extract_strided_slice %375 {offsets = [0, 224], sizes = [8, 32], strides = [1, 1]} : vector<8x256xf32> to vector<8x32xf32>
    %387 = arith.mulf %386, %383 : vector<8x32xf32>
    %388 = vector.shape_cast %385 : vector<8x1xi1> to vector<8x1xi1>
    %389 = vector.broadcast %388 : vector<8x1xi1> to vector<8x32xi1>
    %390 = arith.select %389, %387, %362 : vector<8x32xi1>, vector<8x32xf32>
    %c0_29 = arith.constant 0 : index
    %c0_30 = arith.constant 0 : index
    %391 = vector.load %arg5[%c0_29, %c0_30] : memref<32x8xf32, #tpu.memory_space<vmem>>, vector<32x8xf32>
    %cst_31 = arith.constant dense<0.000000e+00> : vector<8x8xf32>
    %392 = tpu.matmul %390, %391, %cst_31 {dimension_numbers = #tpu.dot_dimension_numbers<[1], [0], [0], [1], [0, 0, 1, 1], [], []>} : vector<8x32xf32>, vector<32x8xf32>, vector<8x8xf32> -> vector<8x8xf32>
    %c0_32 = arith.constant 0 : index
    %c0_33 = arith.constant 0 : index
    %393 = vector.load %arg6[%c0_32, %c0_33] : memref<1x8xf32, #tpu.memory_space<vmem>>, vector<1x8xf32>
    %394 = vector.broadcast %393 : vector<1x8xf32> to vector<8x8xf32>
    %395 = arith.addf %392, %394 : vector<8x8xf32>
    %c0_34 = arith.constant 0 : index
    %c0_35 = arith.constant 0 : index
    %396 = vector.load %arg7[%c0_34, %c0_35] : memref<8x8xf32, #tpu.memory_space<vmem>>, vector<8x8xf32>
    tpu.vector_store %arg7[%c0_34, %c0_35], %395 {strides = array<i32>} : memref<8x8xf32, #tpu.memory_space<vmem>>, vector<8x8xf32>,
    return
  }
}

</mosaic_0001>

<bundles_post_ra>
// kernel: lstm_model_forward.1
= control target key start
LH: loop header
LB: loop body
LE: loop exit
PB: predicated region body
PF: predicated region fallthrough
CT: control target
= control target key end

     0   :  { %v1707_v3 = vmov 0.0   ;;  %vm50_vm0 = vcmask 130048   ;;  %v1708_v22 = vmov 0   ;;  %v40_v25 = vlaneseq  ;;  %s1709_s23 = smov 64   ;;  %s1711_s28 = smov 96   ;;  %s2500_s4 = inlined_call_operand.vmem [shape: f32[64,256], index: 4, kind: input, shape index: {}]   ;;  %s2501_s2 = inlined_call_operand.vmem [shape: f32[16,256], index: 2, kind: input, shape index: {}]   ;;  %s2502_s0 = inlined_call_operand.vmem [shape: f32[64,16], index: 0, kind: input, shape index: {}]   ;;  %s2503_s1 = inlined_call_operand.vmem [shape: s32[8,8,1], index: 1, kind: input, shape index: {}]   ;;  %s2504_s3 = inlined_call_operand.vmem [shape: f32[1,256], index: 3, kind: input, shape index: {}]   ;;  %s2505_s5 = inlined_call_operand.vmem [shape: f32[32,8], index: 5, kind: input, shape index: {}]   ;;  %s2506_s6 = inlined_call_operand.vmem [shape: f32[1,8], index: 6, kind: input, shape index: {}]   ;;  %s2507_s7 = inlined_call_operand.vmem [shape: f32[8,8], index: 7, kind: output, shape index: {}]  }
   0x1   :  { %v1756_v0 = vld [vmem:[%s2500_s4 + $0x78] sm:$0xff]  ;;  %v1761_v1 = vld [vmem:[%s2500_s4 + $0x70] sm:$0xff]  ;;  %v1766_v2 = vld [vmem:[%s2500_s4 + $0x68] sm:$0xff]  ;;  %139 = vmatprep.mubr.f32.mxu0 %v1707_v3  ;;  %287 = vmatprep.mubr.f32.mxu1 %v1707_v3  ;;  %vm328_vm3 = vcmask 261120   ;;  %vm219_vm4 = vcmask 523264  }
   0x2   :  { %239 = vmatprep.subr.mxu1 %v1756_v0  ;;  %v1774_v4 = vld [vmem:[%s2500_s4 + $0x60] sm:$0xff]  ;;  %v1780_v5 = vld [vmem:[%s2500_s4 + $0x58] sm:$0xff]  ;;  %v1789_v7 = vld [vmem:[%s2500_s4 + $0x50] sm:$0xff]  ;;  %1576 = vset.pattern.permute.xlu1 %v1708_v22  ;;  %v1910_v26 = vshrl.u32 %v40_v25, 7 }
   0x3   :  { %240 = vmatpush1.msra.mxu1 %v1761_v1  ;;  %v37_v6 = vld [vmem:[%s2501_s2 + $0x18] sm:$0xff]  ;;  %v36_v8 = vld [vmem:[%s2501_s2 + $0x10] sm:$0xff]  ;;  %v1798_v9 = vld [vmem:[%s2500_s4 + $0x48] sm:$0xff]  ;;  %1577 = vset.pattern.permute.xlu0 %v1708_v22 }
   0x4   :  { %241 = vmatprep.subr.mxu1 %v1766_v2  ;;  %103 = vmatprep.subr.mxu0 %v37_v6  ;;  %v35_v10 = vld [vmem:[%s2501_s2 + $0x8] sm:$0xff]  ;;  %v34_v11 = vld [vmem:[%s2501_s2] sm:$0xff]  ;;  %v1819_v14 = vld [vmem:[%s2500_s4 + $0x38] sm:$0xff]  ;;  %v42_v27 = vsub.s32 0, %v1910_v26  ;;  %v46_v54 = vsub.s32 1, %v1910_v26 }
   0x5   :  { %242 = vmatpush1.msra.mxu1 %v1774_v4  ;;  %104 = vmatpush1.msra.mxu0 %v36_v8  ;;  %v1810_v12 = vld [vmem:[%s2500_s4 + $0x40] sm:$0xff]  ;;  %v1825_v15 = vld [vmem:[%s2500_s4 + $0x30] sm:$0xff]  ;;  %v1832_v16 = vld [vmem:[%s2500_s4 + $0x28] sm:$0xff] }
   0x6   :  { %243 = vmatprep.subr.mxu1 %v1780_v5  ;;  %105 = vmatprep.subr.mxu0 %v35_v10  ;;  %v26_v13 = vld [vmem:[%s2502_s0] sm:$0xff]  ;;  %v1846_v18 = vld [vmem:[%s2500_s4 + $0x18] sm:$0xff]  ;;  %v1853_v19 = vld [vmem:[%s2500_s4 + $0x10] sm:$0xff] }
   0x7   :  { %244 = vmatpush1.msra.mxu1 %v1789_v7  ;;  %106 = vmatpush1.msra.mxu0 %v34_v11  ;;  %v1839_v17 = vld [vmem:[%s2500_s4 + $0x20] sm:$0xff]  ;;  %v1860_v20 = vld [vmem:[%s2500_s4 + $0x8] sm:$0xff] }
   0x8   :  { %245 = vmatprep.subr.mxu1 %v1798_v9  ;;  %1520 = vmatmul.mubr.msk.f32.vlgmr.msra.gmra.mxu0 %vm50_vm0, %v26_v13  ;;  %v1867_v21 = vld [vmem:[%s2500_s4] sm:$0xff]  ;;  %v27_v46 = vld [vmem:[%s2502_s0 + $0x8] sm:$0xff] }
   0x9   :  { %246 = vmatpush1.msra.mxu1 %v1810_v12  ;;  %144 = vmatprep.mubr.f32.mxu0 %v1707_v3  ;;  %v187_v23 = vld [vmem:[%s2503_s1] sm:$0xff] }
   0xa   :  { %247 = vmatprep.subr.mxu1 %v1819_v14  ;;  %492 = vmatprep.subr.mxu0 %v1756_v0  ;;  %vm195_vm1 = vcmp.ne.s32.totalorder %v187_v23, 0  ;;  %v38_v28 = vld [vmem:[%s2504_s3] sm:$0x3]  ;;  %s1710_s3 = smov 32  }
   0xb   :  { %248 = vmatpush1.msra.mxu1 %v1825_v15  ;;  %493 = vmatpush1.msra.mxu0 %v1761_v1  ;;  %v317_v24 = vsel %vm195_vm1, 1, %v1708_v22  ;;  %v1916_v31 = vrot.slane %v38_v28, %v42_v27  ;;  %v1960_v57 = vrot.slane %v38_v28, %v46_v54 }
   0xc   :  { %249 = vmatprep.subr.mxu1 %v1832_v16  ;;  %494 = vmatprep.subr.mxu0 %v1766_v2 }
   0xd   :  { %250 = vmatpush1.msra.mxu1 %v1839_v17  ;;  %495 = vmatpush1.msra.mxu0 %v1774_v4 }
   0xe   :  { %251 = vmatprep.subr.mxu1 %v1846_v18  ;;  %496 = vmatprep.subr.mxu0 %v1780_v5 }
   0xf   :  { %252 = vmatpush1.msra.mxu1 %v1853_v19  ;;  %497 = vmatpush1.msra.mxu0 %v1789_v7 }
  0x10   :  { %253 = vmatprep.subr.mxu1 %v1860_v20  ;;  %498 = vmatprep.subr.mxu0 %v1798_v9 }
  0x11   :  { %254 = vmatpush1.msra.mxu1 %v1867_v21  ;;  %499 = vmatpush1.msra.mxu0 %v1810_v12 }
  0x12   :  { %288 = vmatmul.mubr.f32.vlgmr.msra.gmra.mxu1 %v1707_v3  ;;  %349 = vmatprep.subr.mxu1 %v1756_v0 }
  0x13   :  { %350 = vmatpush1.msra.mxu1 %v1761_v1  ;;  %397 = vmatprep.mubr.f32.mxu1 %v1707_v3 }
  0x14   :  { %351 = vmatprep.subr.mxu1 %v1766_v2  ;;  %500 = vmatprep.subr.mxu0 %v1819_v14 }
  0x15   :  { %352 = vmatpush1.msra.mxu1 %v1774_v4  ;;  %501 = vmatpush1.msra.mxu0 %v1825_v15 }
  0x16   :  { %353 = vmatprep.subr.mxu1 %v1780_v5  ;;  %502 = vmatprep.subr.mxu0 %v1832_v16 }
  0x17   :  { %354 = vmatpush1.msra.mxu1 %v1789_v7  ;;  %503 = vmatpush1.msra.mxu0 %v1839_v17 }
  0x18   :  { %355 = vmatprep.subr.mxu1 %v1798_v9  ;;  %504 = vmatprep.subr.mxu0 %v1846_v18 }
  0x19   :  { %356 = vmatpush1.msra.mxu1 %v1810_v12  ;;  %505 = vmatpush1.msra.mxu0 %v1853_v19 }
  0x1a   :  { %357 = vmatprep.subr.mxu1 %v1819_v14  ;;  %506 = vmatprep.subr.mxu0 %v1860_v20 }
  0x1b   :  { %358 = vmatpush1.msra.mxu1 %v1825_v15  ;;  %507 = vmatpush1.msra.mxu0 %v1867_v21 }
  0x1c   :  { %359 = vmatprep.subr.mxu1 %v1832_v16  ;;  %778 = vmatprep.subr.mxu0 %v1756_v0 }
  0x1d   :  { %360 = vmatpush1.msra.mxu1 %v1839_v17  ;;  %319 = vperm.xlu1 %1576, %v317_v24  }
  0x1e   :  { %361 = vmatprep.subr.mxu1 %v1846_v18  ;;  %1521 = vmatmul.mubr.msk.f32.gmra.mxu0 %vm50_vm0, %v27_v46 }
  0x1f   :  { %362 = vmatpush1.msra.mxu1 %v1853_v19  ;;  %150 = vmatprep.mubr.f32.mxu0 %v1707_v3 }
  0x20   :  { %363 = vmatprep.subr.mxu1 %v1860_v20 }
  0x21   :  { %364 = vmatpush1.msra.mxu1 %v1867_v21 }
  0x22   :  { %635 = vmatprep.subr.mxu1 %v1756_v0 }
  0x98   :  { %v1930_v48 = vpop.permute.xlu1 %319 }
  0x99   :  { %vm321_vm2 = vcmp.eq.s32.totalorder %v1930_v48, 1 }
  0xc8   :  { %v141_v29 = vpop.f32.mrf.mxu0 }
  0xc9   :  { %v142_v32 = vadd.f32 %v141_v29, %v1916_v31  ;;  %v188_v29 = vld [vmem:[%s2503_s1 + $0x8] sm:$0xff] }
  0xca   :  { %v143_v30 = vpop.f32.mrf.mxu0  ;;  %vm196_vm5 = vcmp.ne.s32.totalorder %v188_v29, 0 }
  0xd2   :  { %v289_v33 = vpop.f32.mrf.mxu1 }
  0xd3   :  { %v290_v34 = vadd.f32 %v289_v33, %v142_v32 }
  0xd4   :  { %v291_v35 = vpop.f32.mrf.mxu1 }
  0xd5   :  { %1578 = vtanh.f32 %v290_v34  ;;  %v1528_v37 = vmul.f32 -1.442695, %v290_v34  ;;  %v451_v34 = vsel %vm196_vm5, 1, %v1708_v22  ;;  %vm1514_vm5 = vcmask 64512  }
  0xd7   :  { %1580 = vpow2.f32 %v1528_v37 }
  0xde   :  { %v146_v55 = vpop.f32.mrf.mxu0 }
  0xdf   :  { %v147_v56 = vadd.f32 %v146_v55, %v1916_v31 }
  0xe0   :  { %v148_v58 = vpop.f32.mrf.mxu0 }
  0xe1   :  { %v149_v60 = vadd.f32 %v148_v58, %v1960_v57 }
  0xe2   :  { %v1579_v36 = vpop.eup %1578 }
  0xe3   :  { %302 = vrot.lane.b32.xlu0 %v1579_v36, %s1709_s23 }
  0xe4   :  { %v1581_v38 = vpop.eup %1580 }
  0xe5   :  { %v296_v39 = vadd.f32 1.0, %v1581_v38 }
  0xe7   :  { %1582 = vrcp.f32 %v296_v39 }
  0xf4   :  { %v1583_v40 = vpop.eup %1582 }
  0xf5   :  { %v300_v43 = vmul.f32 0.0, %v1583_v40 }
 0x155   :  { %v303_v41 = vpop.permute.xlu0 %302 }
 0x156   :  { %v305_v42 = vmul.f32 %v1583_v40, %v303_v41 }
 0x158   :  { %307 = vrot.lane.b32.xlu0 %v305_v42, %s1710_s3 }
 0x1ca   :  { %v308_v44 = vpop.permute.xlu0 %307 }
 0x1cb   :  { %v1921_v45 = vadd.f32 %v308_v44, %v300_v43  ;;  %v28_v44 = vld [vmem:[%s2502_s0 + $0x10] sm:$0xff] }
 0x1cc   :  { %1522 = vmatmul.mubr.msk.f32.gmra.mxu0 %vm50_vm0, %v28_v44 }
 0x1cd   :  { %1584 = vtanh.f32 %v1921_v45  ;;  %v1974_v35 = vsel %vm321_vm2, %v1921_v45, 0.0  ;;  %156 = vmatprep.mubr.f32.mxu0 %v1707_v3  ;;  %v29_v45 = vld [vmem:[%s2502_s0 + $0x18] sm:$0xff] }
 0x1d0   :  { %1523 = vmatmul.mubr.msk.f32.gmra.mxu0 %vm50_vm0, %v29_v45 }
 0x1d1   :  { %162 = vmatprep.mubr.f32.mxu0 %v1707_v3 }
 0x1da   :  { %v1585_v47 = vpop.eup %1584 }
 0x1db   :  { %313 = vrot.lane.b32.xlu1 %v1585_v47, %s1709_s23  ;;  %v30_v47 = vld [vmem:[%s2502_s0 + $0x20] sm:$0xff] }
 0x1dc   :  { %1524 = vmatmul.mubr.msk.f32.gmra.mxu0 %vm50_vm0, %v30_v47 }
 0x1dd   :  { %168 = vmatprep.mubr.f32.mxu0 %v1707_v3 }
 0x24d   :  { %v314_v49 = vpop.permute.xlu1 %313 }
 0x24e   :  { %v316_v50 = vmul.f32 %v1583_v40, %v314_v49  ;;  %v31_v49 = vld [vmem:[%s2502_s0 + $0x28] sm:$0xff] }
 0x24f   :  { %1525 = vmatmul.mubr.msk.f32.gmra.mxu0 %vm50_vm0, %v31_v49 }
 0x250   :  { %v1935_v51 = vsel %vm321_vm2, %v316_v50, 0.0  ;;  %174 = vmatprep.mubr.f32.mxu0 %v1707_v3  ;;  %v32_v50 = vld [vmem:[%s2502_s0 + $0x30] sm:$0xff] }
 0x251   :  { %325 = vrot.lane.b32.xlu0 %v1935_v51, %s1710_s3 }
 0x253   :  { %1526 = vmatmul.mubr.msk.f32.gmra.mxu0 %vm50_vm0, %v32_v50 }
 0x254   :  { %180 = vmatprep.mubr.f32.mxu0 %v1707_v3 }
 0x2c3   :  { %v326_v52 = vpop.permute.xlu0 %325 }
 0x2c4   :  { %v329_v53 = vsel %vm328_vm3, %v326_v52, 0.0  ;;  %v33_v52 = vld [vmem:[%s2502_s0 + $0x38] sm:$0xff] }
 0x2c5   :  { %1529 = vmatmul.mubr.msk.f32.vlgmr.msra.gmra.mxu1 %vm219_vm4, %v329_v53  ;;  %1527 = vmatmul.mubr.msk.f32.gmra.mxu0 %vm50_vm0, %v33_v52  ;;  %v189_v52 = vld [vmem:[%s2503_s1 + $0x10] sm:$0xff] }
 0x2c6   :  { %636 = vmatpush1.msra.mxu1 %v1761_v1  ;;  %683 = vmatprep.mubr.f32.mxu1 %v1707_v3  ;;  %vm197_vm7 = vcmp.ne.s32.totalorder %v189_v52, 0 }
 0x2c7   :  { %637 = vmatprep.subr.mxu1 %v1766_v2  ;;  %540 = vmatprep.mubr.f32.mxu0 %v1707_v3 }
 0x2c8   :  { %638 = vmatpush1.msra.mxu1 %v1774_v4 }
 0x2c9   :  { %639 = vmatprep.subr.mxu1 %v1780_v5 }
 0x2ca   :  { %640 = vmatpush1.msra.mxu1 %v1789_v7 }
 0x2cb   :  { %641 = vmatprep.subr.mxu1 %v1798_v9 }
 0x2cc   :  { %642 = vmatpush1.msra.mxu1 %v1810_v12 }
 0x2cd   :  { %643 = vmatprep.subr.mxu1 %v1819_v14 }
 0x2ce   :  { %644 = vmatpush1.msra.mxu1 %v1825_v15 }
 0x2cf   :  { %645 = vmatprep.subr.mxu1 %v1832_v16 }
 0x2d0   :  { %646 = vmatpush1.msra.mxu1 %v1839_v17 }
 0x2d1   :  { %647 = vmatprep.subr.mxu1 %v1846_v18 }
 0x2d2   :  { %648 = vmatpush1.msra.mxu1 %v1853_v19 }
 0x2d3   :  { %649 = vmatprep.subr.mxu1 %v1860_v20 }
 0x2d4   :  { %650 = vmatpush1.msra.mxu1 %v1867_v21 }
 0x2d5   :  { %921 = vmatprep.subr.mxu1 %v1756_v0 }
 0x385   :  { %v399_v59 = vpop.f32.mrf.mxu1 }
 0x386   :  { %v400_v61 = vadd.f32 %v399_v59, %v147_v56 }
 0x387   :  { %v401_v62 = vpop.f32.mrf.mxu1 }
 0x388   :  { %1586 = vtanh.f32 %v400_v61  ;;  %v402_v63 = vadd.f32 %v401_v62, %v149_v60  ;;  %v1530_v10 = vmul.f32 -1.442695, %v400_v61 }
 0x38a   :  { %1588 = vtanh.f32 %v402_v63  ;;  %v1531_v11 = vmul.f32 -1.442695, %v402_v63 }
 0x38b   :  { %1590 = vpow2.f32 %v1530_v10 }
 0x38c   :  { %1592 = vpow2.f32 %v1531_v11 }
 0x395   :  { %v1587_v6 = vpop.eup %1586 }
 0x396   :  { %420 = vrot.lane.b32.xlu1 %v1587_v6, %s1709_s23 }
 0x397   :  { %v1589_v8 = vpop.eup %1588 }
 0x398   :  { %431 = vrot.lane.b32.xlu0 %v1589_v8, %s1709_s23  ;;  %v1591_v13 = vpop.eup %1590 }
 0x399   :  { %v1593_v23 = vpop.eup %1592  ;;  %v410_v24 = vadd.f32 1.0, %v1591_v13 }
 0x39a   :  { %v411_v25 = vadd.f32 1.0, %v1593_v23 }
 0x39b   :  { %1594 = vrcp.f32 %v410_v24 }
 0x39c   :  { %1596 = vrcp.f32 %v411_v25 }
 0x3a8   :  { %v1595_v26 = vpop.eup %1594 }
 0x3a9   :  { %v1597_v30 = vpop.eup %1596  ;;  %v418_v36 = vmul.f32 %v1595_v26, %v1974_v35 }
 0x3aa   :  { %v429_v40 = vmul.f32 0.0, %v1597_v30 }
 0x408   :  { %v421_v27 = vpop.permute.xlu1 %420 }
 0x409   :  { %v423_v28 = vmul.f32 %v1595_v26, %v421_v27 }
 0x40a   :  { %v432_v32 = vpop.permute.xlu0 %431 }
 0x40b   :  { %425 = vrot.lane.b32.xlu1 %v423_v28, %s1710_s3  ;;  %v434_v33 = vmul.f32 %v1597_v30, %v432_v32 }
 0x40d   :  { %436 = vrot.lane.b32.xlu0 %v434_v33, %s1710_s3 }
 0x411   :  { %453 = vperm.xlu0 %1577, %v451_v34  }
 0x47d   :  { %v426_v37 = vpop.permute.xlu1 %425 }
 0x47e   :  { %v1977_v38 = vadd.f32 %v426_v37, %v418_v36 }
 0x47f   :  { %v437_v39 = vpop.permute.xlu0 %436 }
 0x480   :  { %441 = vrot.lane.b32.xlu1 %v1977_v38, %s1711_s28  ;;  %v1981_v41 = vadd.f32 %v437_v39, %v429_v40 }
 0x48c   :  { %v2017_v53 = vpop.permute.xlu0 %453 }
 0x48d   :  { %vm455_vm6 = vcmp.eq.s32.totalorder %v2017_v53, 1 }
 0x4f2   :  { %v442_v42 = vpop.permute.xlu1 %441 }
 0x4f3   :  { %v444_v43 = vsel %vm328_vm3, %v442_v42, %v1981_v41 }
 0x4f4   :  { %1598 = vtanh.f32 %v444_v43 }
 0x501   :  { %v1599_v46 = vpop.eup %1598 }
 0x502   :  { %447 = vrot.lane.b32.xlu1 %v1599_v46, %s1711_s28 }
 0x506   :  { %458 = vrot.lane.b32.xlu1 %v1599_v46, %s1709_s23 }
 0x574   :  { %v448_v54 = vpop.permute.xlu1 %447 }
 0x575   :  { %v450_v55 = vmul.f32 %v1595_v26, %v448_v54 }
 0x577   :  { %v2023_v56 = vsel %vm455_vm6, %v450_v55, %v1935_v51  ;;  %v152_v51 = vpop.f32.mrf.mxu0 }
 0x578   :  { %465 = vrot.lane.b32.xlu0 %v2023_v56, %s1710_s3  ;;  %v459_v58 = vpop.permute.xlu1 %458  ;;  %v153_v29 = vadd.f32 %v152_v51, %v1916_v31 }
 0x579   :  { %v461_v59 = vmul.f32 %v1597_v30, %v459_v58  ;;  %v154_v6 = vpop.f32.mrf.mxu0 }
 0x57a   :  { %v155_v32 = vadd.f32 %v154_v6, %v1960_v57  ;;  %v2096_v6 = vsel %vm321_vm2, %v1981_v41, 0.0 }
 0x57b   :  { %v2029_v60 = vsel %vm321_vm2, %v461_v59, 0.0  ;;  %v2052_v8 = vpop.f32.mrf.mxu0  ;;  %v594_v59 = vsel %vm197_vm7, 1, %v1708_v22 }
 0x57c   :  { %469 = vrot.lane.b32.xlu1 %v2029_v60, %s1709_s23 }
 0x57d   :  { %v2054_v10 = vpop.f32.mrf.mxu0 }
 0x57f   :  { %v2056_v11 = vpop.f32.mrf.mxu0 }
 0x581   :  { %v2058_v13 = vpop.f32.mrf.mxu0 }
 0x583   :  { %v2060_v23 = vpop.f32.mrf.mxu0 }
 0x585   :  { %v2062_v24 = vpop.f32.mrf.mxu0 }
 0x587   :  { %v2064_v25 = vpop.f32.mrf.mxu0 }
 0x589   :  { %v2066_v26 = vpop.f32.mrf.mxu0 }
 0x58b   :  { %v2068_v27 = vpop.f32.mrf.mxu0 }
 0x58d   :  { %v2070_v28 = vpop.f32.mrf.mxu0 }
 0x5ea   :  { %v466_v61 = vpop.permute.xlu0 %465 }
 0x5ee   :  { %v470_v62 = vpop.permute.xlu1 %469 }
 0x5ef   :  { %v472_v63 = vsel %vm328_vm3, %v466_v61, %v470_v62  ;;  %v2086_v61 = vsel %vm455_vm6, %v1977_v38, %v1974_v35 }
 0x5f0   :  { %1532 = vmatmul.mubr.msk.f32.vlgmr.msra.gmra.mxu0 %vm219_vm4, %v472_v63 }
 0x5f1   :  { %779 = vmatpush1.msra.mxu0 %v1761_v1  ;;  %826 = vmatprep.mubr.f32.mxu0 %v1707_v3 }
 0x5f2   :  { %780 = vmatprep.subr.mxu0 %v1766_v2 }
 0x5f3   :  { %781 = vmatpush1.msra.mxu0 %v1774_v4 }
 0x5f4   :  { %782 = vmatprep.subr.mxu0 %v1780_v5 }
 0x5f5   :  { %783 = vmatpush1.msra.mxu0 %v1789_v7 }
 0x5f6   :  { %784 = vmatprep.subr.mxu0 %v1798_v9 }
 0x5f7   :  { %785 = vmatpush1.msra.mxu0 %v1810_v12 }
 0x5f8   :  { %786 = vmatprep.subr.mxu0 %v1819_v14 }
 0x5f9   :  { %787 = vmatpush1.msra.mxu0 %v1825_v15 }
 0x5fa   :  { %788 = vmatprep.subr.mxu0 %v1832_v16 }
 0x5fb   :  { %789 = vmatpush1.msra.mxu0 %v1839_v17 }
 0x5fc   :  { %790 = vmatprep.subr.mxu0 %v1846_v18 }
 0x5fd   :  { %791 = vmatpush1.msra.mxu0 %v1853_v19 }
 0x5fe   :  { %792 = vmatprep.subr.mxu0 %v1860_v20 }
 0x5ff   :  { %793 = vmatpush1.msra.mxu0 %v1867_v21 }
 0x600   :  { %1064 = vmatprep.subr.mxu0 %v1756_v0 }
 0x6b0   :  { %v542_v30 = vpop.f32.mrf.mxu0 }
 0x6b1   :  { %v543_v33 = vadd.f32 %v542_v30, %v153_v29 }
 0x6b2   :  { %v544_v34 = vpop.f32.mrf.mxu0 }
 0x6b3   :  { %1600 = vtanh.f32 %v543_v33  ;;  %v545_v36 = vadd.f32 %v544_v34, %v155_v32  ;;  %v1533_v40 = vmul.f32 -1.442695, %v543_v33 }
 0x6b5   :  { %1602 = vtanh.f32 %v545_v36  ;;  %v1534_v42 = vmul.f32 -1.442695, %v545_v36 }
 0x6b6   :  { %1604 = vpow2.f32 %v1533_v40 }
 0x6b7   :  { %1606 = vpow2.f32 %v1534_v42 }
 0x6c0   :  { %v1601_v37 = vpop.eup %1600 }
 0x6c1   :  { %563 = vrot.lane.b32.xlu0 %v1601_v37, %s1709_s23 }
 0x6c2   :  { %v1603_v39 = vpop.eup %1602 }
 0x6c3   :  { %574 = vrot.lane.b32.xlu1 %v1603_v39, %s1709_s23  ;;  %v1605_v43 = vpop.eup %1604 }
 0x6c4   :  { %v1607_v44 = vpop.eup %1606  ;;  %v553_v45 = vadd.f32 1.0, %v1605_v43 }
 0x6c5   :  { %v554_v46 = vadd.f32 1.0, %v1607_v44 }
 0x6c6   :  { %1608 = vrcp.f32 %v553_v45  ;;  %v161_v45 = vadd.f32 %v2054_v10, %v1960_v57 }
 0x6c7   :  { %1610 = vrcp.f32 %v554_v46 }
 0x6d3   :  { %v1609_v47 = vpop.eup %1608 }
 0x6d4   :  { %v1611_v54 = vpop.eup %1610  ;;  %v561_v62 = vmul.f32 %v1609_v47, %v2086_v61 }
 0x6d5   :  { %v572_v30 = vmul.f32 %v1611_v54, %v2096_v6 }
 0x733   :  { %v564_v49 = vpop.permute.xlu0 %563 }
 0x734   :  { %v566_v50 = vmul.f32 %v1609_v47, %v564_v49 }
 0x735   :  { %v575_v55 = vpop.permute.xlu1 %574 }
 0x736   :  { %568 = vrot.lane.b32.xlu0 %v566_v50, %s1710_s3  ;;  %v577_v58 = vmul.f32 %v1611_v54, %v575_v55 }
 0x738   :  { %579 = vrot.lane.b32.xlu1 %v577_v58, %s1710_s3 }
 0x73c   :  { %596 = vperm.xlu1 %1576, %v594_v59  }
 0x7a8   :  { %v569_v63 = vpop.permute.xlu0 %568 }
 0x7a9   :  { %v2089_v51 = vadd.f32 %v569_v63, %v561_v62 }
 0x7aa   :  { %v580_v29 = vpop.permute.xlu1 %579 }
 0x7ab   :  { %584 = vrot.lane.b32.xlu0 %v2089_v51, %s1711_s28  ;;  %v2099_v32 = vadd.f32 %v580_v29, %v572_v30  ;;  %v190_v30 = vld [vmem:[%s2503_s1 + $0x18] sm:$0xff] }
 0x7ac   :  { %vm198_vm9 = vcmp.ne.s32.totalorder %v190_v30, 0 }
 0x7b7   :  { %v2105_v34 = vpop.permute.xlu1 %596 }
 0x7b8   :  { %vm598_vm8 = vcmp.eq.s32.totalorder %v2105_v34, 1 }
 0x81d   :  { %v585_v35 = vpop.permute.xlu0 %584 }
 0x81e   :  { %v587_v38 = vsel %vm328_vm3, %v585_v35, %v2099_v32 }
 0x81f   :  { %1612 = vtanh.f32 %v587_v38 }
 0x82c   :  { %v1613_v33 = vpop.eup %1612 }
 0x82d   :  { %601 = vrot.lane.b32.xlu1 %v1613_v33, %s1709_s23  ;;  %590 = vrot.lane.b32.xlu0 %v1613_v33, %s1711_s28 }
 0x89f   :  { %v602_v48 = vpop.permute.xlu1 %601  ;;  %v591_v41 = vpop.permute.xlu0 %590 }
 0x8a0   :  { %v604_v36 = vmul.f32 %v1611_v54, %v602_v48  ;;  %v593_v37 = vmul.f32 %v1609_v47, %v591_v41  ;;  %v737_v48 = vsel %vm198_vm9, 1, %v1708_v22  ;;  %v2157_v41 = vsel %vm598_vm8, %v2089_v51, %v2086_v61 }
 0x8a2   :  { %v2111_v39 = vsel %vm455_vm6, %v604_v36, %v2029_v60  ;;  %v2116_v40 = vsel %vm598_vm8, %v593_v37, %v2023_v56  ;;  %v159_v56 = vadd.f32 %v2052_v8, %v1916_v31 }
 0x8a3   :  { %612 = vrot.lane.b32.xlu1 %v2111_v39, %s1709_s23  ;;  %608 = vrot.lane.b32.xlu0 %v2116_v40, %s1710_s3 }
 0x915   :  { %v613_v42 = vpop.permute.xlu1 %612  ;;  %v609_v43 = vpop.permute.xlu0 %608 }
 0x916   :  { %v615_v44 = vsel %vm328_vm3, %v609_v43, %v613_v42  ;;  %v2168_v43 = vsel %vm455_vm6, %v2099_v32, %v2096_v6 }
 0x917   :  { %1535 = vmatmul.mubr.msk.f32.vlgmr.msra.gmra.mxu1 %vm219_vm4, %v615_v44 }
 0x918   :  { %922 = vmatpush1.msra.mxu1 %v1761_v1  ;;  %969 = vmatprep.mubr.f32.mxu1 %v1707_v3 }
 0x919   :  { %923 = vmatprep.subr.mxu1 %v1766_v2 }
 0x91a   :  { %924 = vmatpush1.msra.mxu1 %v1774_v4 }
 0x91b   :  { %925 = vmatprep.subr.mxu1 %v1780_v5 }
 0x91c   :  { %926 = vmatpush1.msra.mxu1 %v1789_v7 }
 0x91d   :  { %927 = vmatprep.subr.mxu1 %v1798_v9 }
 0x91e   :  { %928 = vmatpush1.msra.mxu1 %v1810_v12 }
 0x91f   :  { %929 = vmatprep.subr.mxu1 %v1819_v14 }
 0x920   :  { %930 = vmatpush1.msra.mxu1 %v1825_v15 }
 0x921   :  { %931 = vmatprep.subr.mxu1 %v1832_v16 }
 0x922   :  { %932 = vmatpush1.msra.mxu1 %v1839_v17 }
 0x923   :  { %933 = vmatprep.subr.mxu1 %v1846_v18 }
 0x924   :  { %934 = vmatpush1.msra.mxu1 %v1853_v19 }
 0x925   :  { %935 = vmatprep.subr.mxu1 %v1860_v20 }
 0x926   :  { %936 = vmatpush1.msra.mxu1 %v1867_v21 }
 0x927   :  { %1207 = vmatprep.subr.mxu1 %v1756_v0 }
 0x9d7   :  { %v685_v60 = vpop.f32.mrf.mxu1 }
 0x9d8   :  { %v686_v46 = vadd.f32 %v685_v60, %v159_v56 }
 0x9d9   :  { %v687_v47 = vpop.f32.mrf.mxu1 }
 0x9da   :  { %1614 = vtanh.f32 %v686_v46  ;;  %v688_v49 = vadd.f32 %v687_v47, %v161_v45  ;;  %v1536_v54 = vmul.f32 -1.442695, %v686_v46 }
 0x9dc   :  { %1616 = vtanh.f32 %v688_v49  ;;  %v1537_v55 = vmul.f32 -1.442695, %v688_v49 }
 0x9dd   :  { %1618 = vpow2.f32 %v1536_v54 }
 0x9de   :  { %1620 = vpow2.f32 %v1537_v55 }
 0x9e7   :  { %v1615_v50 = vpop.eup %1614 }
 0x9e8   :  { %706 = vrot.lane.b32.xlu0 %v1615_v50, %s1709_s23 }
 0x9e9   :  { %v1617_v52 = vpop.eup %1616 }
 0x9ea   :  { %717 = vrot.lane.b32.xlu1 %v1617_v52, %s1709_s23  ;;  %v1619_v8 = vpop.eup %1618 }
 0x9eb   :  { %v1621_v58 = vpop.eup %1620  ;;  %v696_v59 = vadd.f32 1.0, %v1619_v8  ;;  %v167_v8 = vadd.f32 %v2058_v13, %v1960_v57 }
 0x9ec   :  { %v697_v62 = vadd.f32 1.0, %v1621_v58 }
 0x9ed   :  { %1622 = vrcp.f32 %v696_v59 }
 0x9ee   :  { %1624 = vrcp.f32 %v697_v62 }
 0x9fa   :  { %v1623_v10 = vpop.eup %1622 }
 0x9fb   :  { %v1625_v35 = vpop.eup %1624  ;;  %v704_v36 = vmul.f32 %v1623_v10, %v2157_v41 }
 0x9fc   :  { %v715_v56 = vmul.f32 %v1625_v35, %v2168_v43 }
 0xa5a   :  { %v707_v63 = vpop.permute.xlu0 %706 }
 0xa5b   :  { %v709_v29 = vmul.f32 %v1623_v10, %v707_v63 }
 0xa5c   :  { %v718_v38 = vpop.permute.xlu1 %717 }
 0xa5d   :  { %711 = vrot.lane.b32.xlu0 %v709_v29, %s1710_s3  ;;  %v720_v33 = vmul.f32 %v1625_v35, %v718_v38 }
 0xa5f   :  { %722 = vrot.lane.b32.xlu1 %v720_v33, %s1710_s3 }
 0xa63   :  { %739 = vperm.xlu1 %1576, %v737_v48  }
 0xacf   :  { %v712_v37 = vpop.permute.xlu0 %711 }
 0xad0   :  { %v2160_v42 = vadd.f32 %v712_v37, %v704_v36  ;;  %v191_v36 = vld [vmem:[%s2503_s1 + $0x20] sm:$0xff] }
 0xad1   :  { %v723_v44 = vpop.permute.xlu1 %722  ;;  %vm199_vm11 = vcmp.ne.s32.totalorder %v191_v36, 0 }
 0xad2   :  { %727 = vrot.lane.b32.xlu0 %v2160_v42, %s1711_s28  ;;  %v2171_v60 = vadd.f32 %v723_v44, %v715_v56 }
 0xade   :  { %v2177_v46 = vpop.permute.xlu1 %739 }
 0xadf   :  { %vm741_vm10 = vcmp.eq.s32.totalorder %v2177_v46, 1 }
 0xb44   :  { %v728_v61 = vpop.permute.xlu0 %727 }
 0xb45   :  { %v730_v51 = vsel %vm328_vm3, %v728_v61, %v2171_v60  ;;  %v880_v61 = vsel %vm199_vm11, 1, %v1708_v22 }
 0xb46   :  { %1626 = vtanh.f32 %v730_v51  ;;  %v2229_v51 = vsel %vm741_vm10, %v2160_v42, %v2157_v41 }
 0xb53   :  { %v1627_v45 = vpop.eup %1626 }
 0xb54   :  { %744 = vrot.lane.b32.xlu1 %v1627_v45, %s1709_s23  ;;  %733 = vrot.lane.b32.xlu0 %v1627_v45, %s1711_s28 }
 0xbc6   :  { %v745_v53 = vpop.permute.xlu1 %744  ;;  %v734_v6 = vpop.permute.xlu0 %733 }
 0xbc7   :  { %v747_v32 = vmul.f32 %v1625_v35, %v745_v53  ;;  %v736_v47 = vmul.f32 %v1623_v10, %v734_v6 }
 0xbc9   :  { %v2183_v49 = vsel %vm598_vm8, %v747_v32, %v2111_v39  ;;  %v2188_v50 = vsel %vm741_vm10, %v736_v47, %v2116_v40  ;;  %v165_v39 = vadd.f32 %v2056_v11, %v1916_v31  ;;  %v2240_v32 = vsel %vm598_vm8, %v2171_v60, %v2168_v43 }
 0xbca   :  { %755 = vrot.lane.b32.xlu1 %v2183_v49, %s1709_s23  ;;  %751 = vrot.lane.b32.xlu0 %v2188_v50, %s1710_s3 }
 0xc3c   :  { %v756_v52 = vpop.permute.xlu1 %755  ;;  %v752_v54 = vpop.permute.xlu0 %751 }
 0xc3d   :  { %v758_v55 = vsel %vm328_vm3, %v752_v54, %v756_v52 }
 0xc3e   :  { %1538 = vmatmul.mubr.msk.f32.vlgmr.msra.gmra.mxu0 %vm219_vm4, %v758_v55 }
 0xc3f   :  { %1065 = vmatpush1.msra.mxu0 %v1761_v1  ;;  %1112 = vmatprep.mubr.f32.mxu0 %v1707_v3 }
 0xc40   :  { %1066 = vmatprep.subr.mxu0 %v1766_v2 }
 0xc41   :  { %1067 = vmatpush1.msra.mxu0 %v1774_v4 }
 0xc42   :  { %1068 = vmatprep.subr.mxu0 %v1780_v5 }
 0xc43   :  { %1069 = vmatpush1.msra.mxu0 %v1789_v7 }
 0xc44   :  { %1070 = vmatprep.subr.mxu0 %v1798_v9 }
 0xc45   :  { %1071 = vmatpush1.msra.mxu0 %v1810_v12 }
 0xc46   :  { %1072 = vmatprep.subr.mxu0 %v1819_v14 }
 0xc47   :  { %1073 = vmatpush1.msra.mxu0 %v1825_v15 }
 0xc48   :  { %1074 = vmatprep.subr.mxu0 %v1832_v16 }
 0xc49   :  { %1075 = vmatpush1.msra.mxu0 %v1839_v17 }
 0xc4a   :  { %1076 = vmatprep.subr.mxu0 %v1846_v18 }
 0xc4b   :  { %1077 = vmatpush1.msra.mxu0 %v1853_v19 }
 0xc4c   :  { %1078 = vmatprep.subr.mxu0 %v1860_v20 }
 0xc4d   :  { %1079 = vmatpush1.msra.mxu0 %v1867_v21 }
 0xc4e   :  { %1349 = vmatprep.subr.mxu0 %v1756_v0 }
 0xcfe   :  { %v828_v40 = vpop.f32.mrf.mxu0 }
 0xcff   :  { %v829_v58 = vadd.f32 %v828_v40, %v165_v39 }
 0xd00   :  { %v830_v59 = vpop.f32.mrf.mxu0 }
 0xd01   :  { %1628 = vtanh.f32 %v829_v58  ;;  %v831_v62 = vadd.f32 %v830_v59, %v167_v8  ;;  %v1539_v29 = vmul.f32 -1.442695, %v829_v58 }
 0xd03   :  { %1630 = vtanh.f32 %v831_v62  ;;  %v1540_v0 = vmul.f32 -1.442695, %v831_v62 }
 0xd04   :  { %1632 = vpow2.f32 %v1539_v29 }
 0xd05   :  { %1634 = vpow2.f32 %v1540_v0 }
 0xd0e   :  { %v1629_v10 = vpop.eup %1628 }
 0xd0f   :  { %849 = vrot.lane.b32.xlu0 %v1629_v10, %s1709_s23 }
 0xd10   :  { %v1631_v63 = vpop.eup %1630 }
 0xd11   :  { %860 = vrot.lane.b32.xlu1 %v1631_v63, %s1709_s23  ;;  %v1633_v11 = vpop.eup %1632 }
 0xd12   :  { %v1635_v30 = vpop.eup %1634  ;;  %v839_v35 = vadd.f32 1.0, %v1633_v11 }
 0xd13   :  { %v840_v38 = vadd.f32 1.0, %v1635_v30 }
 0xd14   :  { %1636 = vrcp.f32 %v839_v35 }
 0xd15   :  { %1638 = vrcp.f32 %v840_v38 }
 0xd21   :  { %v1637_v13 = vpop.eup %1636 }
 0xd22   :  { %v1639_v37 = vpop.eup %1638  ;;  %v847_v45 = vmul.f32 %v1637_v13, %v2229_v51 }
 0xd23   :  { %v858_v52 = vmul.f32 %v1639_v37, %v2240_v32 }
 0xd81   :  { %v850_v33 = vpop.permute.xlu0 %849 }
 0xd82   :  { %v852_v48 = vmul.f32 %v1637_v13, %v850_v33 }
 0xd83   :  { %v861_v44 = vpop.permute.xlu1 %860 }
 0xd84   :  { %854 = vrot.lane.b32.xlu0 %v852_v48, %s1710_s3  ;;  %v863_v56 = vmul.f32 %v1639_v37, %v861_v44 }
 0xd86   :  { %865 = vrot.lane.b32.xlu1 %v863_v56, %s1710_s3 }
 0xd8a   :  { %882 = vperm.xlu1 %1576, %v880_v61  }
 0xdf6   :  { %v855_v53 = vpop.permute.xlu0 %854 }
 0xdf7   :  { %v2232_v6 = vadd.f32 %v855_v53, %v847_v45 }
 0xdf8   :  { %v866_v47 = vpop.permute.xlu1 %865 }
 0xdf9   :  { %870 = vrot.lane.b32.xlu0 %v2232_v6, %s1711_s28  ;;  %v2243_v54 = vadd.f32 %v866_v47, %v858_v52 }
 0xe05   :  { %v2249_v39 = vpop.permute.xlu1 %882 }
 0xe06   :  { %vm884_vm12 = vcmp.eq.s32.totalorder %v2249_v39, 1 }
 0xe07   :  { %v2301_v11 = vsel %vm884_vm12, %v2232_v6, %v2229_v51 }
 0xe6b   :  { %v871_v41 = vpop.permute.xlu0 %870 }
 0xe6c   :  { %v873_v42 = vsel %vm328_vm3, %v871_v41, %v2243_v54  ;;  %v1692_v41 = vld [vmem:[%s2500_s4 + $0x70] sm:$0xff] }
 0xe6d   :  { %1640 = vtanh.f32 %v873_v42  ;;  %v1693_v42 = vld [vmem:[%s2500_s4 + $0x68] sm:$0xff] }
 0xe7a   :  { %v1641_v55 = vpop.eup %1640 }
 0xe7b   :  { %887 = vrot.lane.b32.xlu1 %v1641_v55, %s1709_s23  ;;  %876 = vrot.lane.b32.xlu0 %v1641_v55, %s1711_s28  ;;  %v1694_v55 = vld [vmem:[%s2500_s4 + $0x60] sm:$0xff] }
 0xeed   :  { %v888_v34 = vpop.permute.xlu1 %887  ;;  %v877_v43 = vpop.permute.xlu0 %876 }
 0xeee   :  { %v890_v60 = vmul.f32 %v1639_v37, %v888_v34  ;;  %v879_v40 = vmul.f32 %v1637_v13, %v877_v43  ;;  %v2312_v13 = vsel %vm741_vm10, %v2243_v54, %v2240_v32  ;;  %v1695_v34 = vld [vmem:[%s2500_s4 + $0x58] sm:$0xff]  ;;  %v1696_v43 = vld [vmem:[%s2500_s4 + $0x50] sm:$0xff] }
 0xef0   :  { %v2255_v8 = vsel %vm741_vm10, %v890_v60, %v2183_v49  ;;  %v2260_v58 = vsel %vm884_vm12, %v879_v40, %v2188_v50  ;;  %v192_v49 = vld [vmem:[%s2503_s1 + $0x28] sm:$0xff]  ;;  %v1698_v40 = vld [vmem:[%s2500_s4 + $0x40] sm:$0xff] }
 0xef1   :  { %898 = vrot.lane.b32.xlu1 %v2255_v8, %s1709_s23  ;;  %894 = vrot.lane.b32.xlu0 %v2260_v58, %s1710_s3  ;;  %vm200_vm13 = vcmp.ne.s32.totalorder %v192_v49, 0  ;;  %v1697_v60 = vld [vmem:[%s2500_s4 + $0x48] sm:$0xff] }
 0xef2   :  { %v1023_v0 = vsel %vm200_vm13, 1, %v1708_v22 }
 0xf63   :  { %v899_v59 = vpop.permute.xlu1 %898  ;;  %v895_v62 = vpop.permute.xlu0 %894 }
 0xf64   :  { %v901_v10 = vsel %vm328_vm3, %v895_v62, %v899_v59  ;;  %v1701_v59 = vld [vmem:[%s2500_s4 + $0x28] sm:$0xff]  ;;  %v1702_v62 = vld [vmem:[%s2500_s4 + $0x20] sm:$0xff] }
 0xf65   :  { %1541 = vmatmul.mubr.msk.f32.vlgmr.msra.gmra.mxu1 %vm219_vm4, %v901_v10  ;;  %v1703_v10 = vld [vmem:[%s2500_s4 + $0x18] sm:$0xff] }
 0xf66   :  { %1208 = vmatpush1.msra.mxu1 %v1761_v1  ;;  %1255 = vmatprep.mubr.f32.mxu1 %v1707_v3  ;;  %v171_v1 = vadd.f32 %v2060_v23, %v1916_v31 }
 0xf67   :  { %1209 = vmatprep.subr.mxu1 %v1766_v2 }
 0xf68   :  { %1210 = vmatpush1.msra.mxu1 %v1774_v4  ;;  %v173_v4 = vadd.f32 %v2062_v24, %v1960_v57 }
 0xf69   :  { %1211 = vmatprep.subr.mxu1 %v1780_v5 }
 0xf6a   :  { %1212 = vmatpush1.msra.mxu1 %v1789_v7 }
 0xf6b   :  { %1213 = vmatprep.subr.mxu1 %v1798_v9 }
 0xf6c   :  { %1214 = vmatpush1.msra.mxu1 %v1810_v12 }
 0xf6d   :  { %1215 = vmatprep.subr.mxu1 %v1819_v14 }
 0xf6e   :  { %1216 = vmatpush1.msra.mxu1 %v1825_v15 }
 0xf6f   :  { %1217 = vmatprep.subr.mxu1 %v1832_v16 }
 0xf70   :  { %1218 = vmatpush1.msra.mxu1 %v1839_v17 }
 0xf71   :  { %1219 = vmatprep.subr.mxu1 %v1846_v18 }
 0xf72   :  { %1220 = vmatpush1.msra.mxu1 %v1853_v19 }
 0xf73   :  { %1221 = vmatprep.subr.mxu1 %v1860_v20 }
 0xf74   :  { %1222 = vmatpush1.msra.mxu1 %v1867_v21 }
 0xf75   :  { %1559 = vmatprep.subr.mxu1 %v1707_v3 }
0x1025   :  { %v971_v2 = vpop.f32.mrf.mxu1 }
0x1026   :  { %v972_v5 = vadd.f32 %v971_v2, %v171_v1  ;;  %v1704_v1 = vld [vmem:[%s2500_s4 + $0x10] sm:$0xff]  ;;  %v1705_v2 = vld [vmem:[%s2500_s4 + $0x8] sm:$0xff] }
0x1027   :  { %v973_v7 = vpop.f32.mrf.mxu1 }
0x1028   :  { %1642 = vtanh.f32 %v972_v5  ;;  %v974_v9 = vadd.f32 %v973_v7, %v173_v4  ;;  %v1542_v15 = vmul.f32 -1.442695, %v972_v5  ;;  %v1706_v4 = vld [vmem:[%s2500_s4] sm:$0xff]  ;;  %v177_v5 = vadd.f32 %v2064_v25, %v1916_v31 }
0x102a   :  { %1644 = vtanh.f32 %v974_v9  ;;  %v1543_v16 = vmul.f32 -1.442695, %v974_v9  ;;  %v179_v9 = vadd.f32 %v2066_v26, %v1960_v57 }
0x102b   :  { %1646 = vpow2.f32 %v1542_v15 }
0x102c   :  { %1648 = vpow2.f32 %v1543_v16 }
0x1035   :  { %v1643_v12 = vpop.eup %1642 }
0x1036   :  { %992 = vrot.lane.b32.xlu0 %v1643_v12, %s1709_s23 }
0x1037   :  { %v1645_v14 = vpop.eup %1644 }
0x1038   :  { %1003 = vrot.lane.b32.xlu1 %v1645_v14, %s1709_s23  ;;  %v1647_v17 = vpop.eup %1646 }
0x1039   :  { %v1649_v18 = vpop.eup %1648  ;;  %v982_v19 = vadd.f32 1.0, %v1647_v17 }
0x103a   :  { %v983_v20 = vadd.f32 1.0, %v1649_v18 }
0x103b   :  { %1650 = vrcp.f32 %v982_v19 }
0x103c   :  { %1652 = vrcp.f32 %v983_v20 }
0x1048   :  { %v1651_v21 = vpop.eup %1650 }
0x1049   :  { %v1653_v50 = vpop.eup %1652  ;;  %v990_v30 = vmul.f32 %v1651_v21, %v2301_v11 }
0x104a   :  { %v1001_v48 = vmul.f32 %v1653_v50, %v2312_v13 }
0x10a8   :  { %v993_v23 = vpop.permute.xlu0 %992 }
0x10a9   :  { %v995_v24 = vmul.f32 %v1651_v21, %v993_v23 }
0x10aa   :  { %v1004_v63 = vpop.permute.xlu1 %1003 }
0x10ab   :  { %997 = vrot.lane.b32.xlu0 %v995_v24, %s1710_s3  ;;  %v1006_v29 = vmul.f32 %v1653_v50, %v1004_v63 }
0x10ad   :  { %1008 = vrot.lane.b32.xlu1 %v1006_v29, %s1710_s3 }
0x10b1   :  { %1025 = vperm.xlu1 %1576, %v1023_v0  }
0x111d   :  { %v998_v35 = vpop.permute.xlu0 %997 }
0x111e   :  { %v2304_v38 = vadd.f32 %v998_v35, %v990_v30 }
0x111f   :  { %v1009_v33 = vpop.permute.xlu1 %1008 }
0x1120   :  { %1013 = vrot.lane.b32.xlu0 %v2304_v38, %s1711_s28  ;;  %v2315_v36 = vadd.f32 %v1009_v33, %v1001_v48 }
0x112c   :  { %v2321_v61 = vpop.permute.xlu1 %1025 }
0x112d   :  { %vm1027_vm14 = vcmp.eq.s32.totalorder %v2321_v61, 1 }
0x112e   :  { %v2402_v35 = vsel %vm1027_vm14, %v2304_v38, %v2301_v11 }
0x1192   :  { %v1014_v37 = vpop.permute.xlu0 %1013 }
0x1193   :  { %v1016_v44 = vsel %vm328_vm3, %v1014_v37, %v2315_v36 }
0x1194   :  { %1654 = vtanh.f32 %v1016_v44  ;;  %v2410_v44 = vsel %vm884_vm12, %v2315_v36, %v2312_v13 }
0x11a1   :  { %v1655_v56 = vpop.eup %1654 }
0x11a2   :  { %1030 = vrot.lane.b32.xlu1 %v1655_v56, %s1709_s23  ;;  %1019 = vrot.lane.b32.xlu0 %v1655_v56, %s1711_s28 }
0x1214   :  { %v1031_v46 = vpop.permute.xlu1 %1030  ;;  %v1020_v51 = vpop.permute.xlu0 %1019 }
0x1215   :  { %v1033_v45 = vmul.f32 %v1653_v50, %v1031_v46  ;;  %v1022_v53 = vmul.f32 %v1651_v21, %v1020_v51  ;;  %v193_v50 = vld [vmem:[%s2503_s1 + $0x30] sm:$0xff] }
0x1216   :  { %vm201_vm15 = vcmp.ne.s32.totalorder %v193_v50, 0 }
0x1217   :  { %v2327_v6 = vsel %vm884_vm12, %v1033_v45, %v2255_v8  ;;  %v2332_v32 = vsel %vm1027_vm14, %v1022_v53, %v2260_v58  ;;  %v1699_v8 = vld [vmem:[%s2500_s4 + $0x38] sm:$0xff]  ;;  %v1700_v58 = vld [vmem:[%s2500_s4 + $0x30] sm:$0xff]  ;;  %v1166_v30 = vsel %vm201_vm15, 1, %v1708_v22 }
0x1218   :  { %1041 = vrot.lane.b32.xlu1 %v2327_v6, %s1709_s23  ;;  %1037 = vrot.lane.b32.xlu0 %v2332_v32, %s1710_s3 }
0x128a   :  { %v1042_v47 = vpop.permute.xlu1 %1041  ;;  %v1038_v52 = vpop.permute.xlu0 %1037 }
0x128b   :  { %v1044_v54 = vsel %vm328_vm3, %v1038_v52, %v1042_v47 }
0x128c   :  { %1544 = vmatmul.mubr.msk.f32.vlgmr.msra.gmra.mxu0 %vm219_vm4, %v1044_v54 }
0x128d   :  { %1350 = vmatpush1.msra.mxu0 %v1692_v41  ;;  %1397 = vmatprep.mubr.f32.mxu0 %v1707_v3 }
0x128e   :  { %1351 = vmatprep.subr.mxu0 %v1693_v42 }
0x128f   :  { %1352 = vmatpush1.msra.mxu0 %v1694_v55 }
0x1290   :  { %1353 = vmatprep.subr.mxu0 %v1695_v34 }
0x1291   :  { %1354 = vmatpush1.msra.mxu0 %v1696_v43 }
0x1292   :  { %1355 = vmatprep.subr.mxu0 %v1697_v60 }
0x1293   :  { %1356 = vmatpush1.msra.mxu0 %v1698_v40 }
0x1294   :  { %1357 = vmatprep.subr.mxu0 %v1699_v8 }
0x1295   :  { %1358 = vmatpush1.msra.mxu0 %v1700_v58 }
0x1296   :  { %1359 = vmatprep.subr.mxu0 %v1701_v59 }
0x1297   :  { %1360 = vmatpush1.msra.mxu0 %v1702_v62 }
0x1298   :  { %1361 = vmatprep.subr.mxu0 %v1703_v10 }
0x1299   :  { %1362 = vmatpush1.msra.mxu0 %v1704_v1 }
0x129a   :  { %1363 = vmatprep.subr.mxu0 %v1705_v2 }
0x129b   :  { %1364 = vmatpush1.msra.mxu0 %v1706_v4  ;;  %v194_v4 = vld [vmem:[%s2503_s1 + $0x38] sm:$0xff] }
0x129c   :  { %vm202_vm1 = vcmp.ne.s32.totalorder %v194_v4, 0 }
0x134c   :  { %v1114_v7 = vpop.f32.mrf.mxu0 }
0x134d   :  { %v1115_v12 = vadd.f32 %v1114_v7, %v177_v5 }
0x134e   :  { %v1116_v14 = vpop.f32.mrf.mxu0 }
0x134f   :  { %1656 = vtanh.f32 %v1115_v12  ;;  %v1117_v15 = vadd.f32 %v1116_v14, %v179_v9  ;;  %v1545_v18 = vmul.f32 -1.442695, %v1115_v12  ;;  %v1309_v12 = vsel %vm202_vm1, 1, %v1708_v22 }
0x1351   :  { %1658 = vtanh.f32 %v1117_v15  ;;  %v1546_v19 = vmul.f32 -1.442695, %v1117_v15 }
0x1352   :  { %1660 = vpow2.f32 %v1545_v18 }
0x1353   :  { %1662 = vpow2.f32 %v1546_v19 }
0x135c   :  { %v1657_v16 = vpop.eup %1656 }
0x135d   :  { %1135 = vrot.lane.b32.xlu0 %v1657_v16, %s1709_s23 }
0x135e   :  { %v1659_v17 = vpop.eup %1658 }
0x135f   :  { %1146 = vrot.lane.b32.xlu1 %v1659_v17, %s1709_s23  ;;  %v1661_v25 = vpop.eup %1660 }
0x1360   :  { %v1663_v20 = vpop.eup %1662  ;;  %v1125_v21 = vadd.f32 1.0, %v1661_v25 }
0x1361   :  { %v1126_v23 = vadd.f32 1.0, %v1663_v20 }
0x1362   :  { %1664 = vrcp.f32 %v1125_v21 }
0x1363   :  { %1666 = vrcp.f32 %v1126_v23 }
0x136f   :  { %v1665_v26 = vpop.eup %1664 }
0x1370   :  { %v1667_v63 = vpop.eup %1666  ;;  %v1133_v33 = vmul.f32 %v1665_v26, %v2402_v35 }
0x1371   :  { %v1144_v46 = vmul.f32 %v1667_v63, %v2410_v44 }
0x13cf   :  { %v1136_v24 = vpop.permute.xlu0 %1135 }
0x13d0   :  { %v1138_v49 = vmul.f32 %v1665_v26, %v1136_v24 }
0x13d1   :  { %v1147_v29 = vpop.permute.xlu1 %1146 }
0x13d2   :  { %1140 = vrot.lane.b32.xlu0 %v1138_v49, %s1710_s3  ;;  %v1149_v0 = vmul.f32 %v1667_v63, %v1147_v29 }
0x13d4   :  { %1151 = vrot.lane.b32.xlu1 %v1149_v0, %s1710_s3 }
0x13d8   :  { %1168 = vperm.xlu1 %1576, %v1166_v30  }
0x1444   :  { %v1141_v48 = vpop.permute.xlu0 %1140 }
0x1445   :  { %v1143_v37 = vadd.f32 %v1141_v48, %v1133_v33 }
0x1446   :  { %v1152_v56 = vpop.permute.xlu1 %1151 }
0x1447   :  { %1156 = vrot.lane.b32.xlu0 %v1143_v37, %s1711_s28  ;;  %v1154_v51 = vadd.f32 %v1152_v56, %v1144_v46 }
0x1449   :  { %v1178_v18 = vsel %vm1027_vm14, %v1154_v51, %v2410_v44 }
0x1453   :  { %v2416_v53 = vpop.permute.xlu1 %1168 }
0x1454   :  { %vm1170_vm0 = vcmp.eq.s32.totalorder %v2416_v53, 1  ;;  %v1429_v53 = vld [vmem:[%s2505_s5 + $0x8] sm:$0xff] }
0x1455   :  { %v1172_v14 = vsel %vm1170_vm0, %v1143_v37, %v2402_v35 }
0x14b9   :  { %v1157_v45 = vpop.permute.xlu0 %1156 }
0x14ba   :  { %v1159_v11 = vsel %vm328_vm3, %v1157_v45, %v1154_v51 }
0x14bb   :  { %1668 = vtanh.f32 %v1159_v11 }
0x14c8   :  { %v1669_v38 = vpop.eup %1668 }
0x14c9   :  { %1173 = vrot.lane.b32.xlu1 %v1669_v38, %s1709_s23  ;;  %1162 = vrot.lane.b32.xlu0 %v1669_v38, %s1711_s28 }
0x153b   :  { %v1174_v47 = vpop.permute.xlu1 %1173  ;;  %v1163_v52 = vpop.permute.xlu0 %1162 }
0x153c   :  { %v1176_v39 = vmul.f32 %v1667_v63, %v1174_v47  ;;  %v1165_v13 = vmul.f32 %v1665_v26, %v1163_v52 }
0x153e   :  { %v2422_v36 = vsel %vm1027_vm14, %v1176_v39, %v2327_v6  ;;  %v2427_v54 = vsel %vm1170_vm0, %v1165_v13, %v2332_v32  ;;  %v183_v6 = vadd.f32 %v2068_v27, %v1916_v31  ;;  %v2439_v32 = vadd.f32 %v2070_v28, %v1960_v57 }
0x153f   :  { %1184 = vrot.lane.b32.xlu1 %v2422_v36, %s1709_s23  ;;  %1180 = vrot.lane.b32.xlu0 %v2427_v54, %s1710_s3 }
0x15b1   :  { %v1185_v41 = vpop.permute.xlu1 %1184  ;;  %v1181_v42 = vpop.permute.xlu0 %1180 }
0x15b2   :  { %v1187_v55 = vsel %vm328_vm3, %v1181_v42, %v1185_v41  ;;  %v1428_v41 = vld [vmem:[%s2505_s5] sm:$0xff] }
0x15b3   :  { %1547 = vmatmul.mubr.msk.f32.vlgmr.msra.gmra.mxu1 %vm219_vm4, %v1187_v55 }
0x1673   :  { %v1257_v34 = vpop.f32.mrf.mxu1 }
0x1674   :  { %v1258_v43 = vadd.f32 %v1257_v34, %v183_v6 }
0x1675   :  { %v1259_v60 = vpop.f32.mrf.mxu1 }
0x1676   :  { %1670 = vtanh.f32 %v1258_v43  ;;  %v1260_v40 = vadd.f32 %v1259_v60, %v2439_v32  ;;  %v1548_v59 = vmul.f32 -1.442695, %v1258_v43  ;;  %v1552_v43 = vld [vmem:[%s2506_s6] ss:$0 sm:$0xff] }
0x1678   :  { %1672 = vtanh.f32 %v1260_v40  ;;  %v1549_v62 = vmul.f32 -1.442695, %v1260_v40 }
0x1679   :  { %1674 = vpow2.f32 %v1548_v59 }
0x167a   :  { %1676 = vpow2.f32 %v1549_v62 }
0x1683   :  { %v1671_v8 = vpop.eup %1670 }
0x1684   :  { %1278 = vrot.lane.b32.xlu0 %v1671_v8, %s1709_s23 }
0x1685   :  { %v1673_v58 = vpop.eup %1672 }
0x1686   :  { %1289 = vrot.lane.b32.xlu1 %v1673_v58, %s1709_s23  ;;  %v1675_v31 = vpop.eup %1674 }
0x1687   :  { %v1677_v27 = vpop.eup %1676  ;;  %v1268_v57 = vadd.f32 1.0, %v1675_v31 }
0x1688   :  { %v1269_v28 = vadd.f32 1.0, %v1677_v27 }
0x1689   :  { %1678 = vrcp.f32 %v1268_v57 }
0x168a   :  { %1680 = vrcp.f32 %v1269_v28 }
0x1696   :  { %v1679_v10 = vpop.eup %1678 }
0x1697   :  { %v1681_v5 = vpop.eup %1680  ;;  %v1276_v15 = vmul.f32 %v1679_v10, %v1172_v14 }
0x1698   :  { %v1287_v25 = vmul.f32 %v1681_v5, %v1178_v18 }
0x16f6   :  { %v1279_v1 = vpop.permute.xlu0 %1278 }
0x16f7   :  { %v1281_v2 = vmul.f32 %v1679_v10, %v1279_v1 }
0x16f8   :  { %v1290_v7 = vpop.permute.xlu1 %1289 }
0x16f9   :  { %1283 = vrot.lane.b32.xlu0 %v1281_v2, %s1710_s3  ;;  %v1292_v9 = vmul.f32 %v1681_v5, %v1290_v7 }
0x16fb   :  { %1294 = vrot.lane.b32.xlu1 %v1292_v9, %s1710_s3 }
0x16ff   :  { %1311 = vperm.xlu1 %1576, %v1309_v12  }
0x176b   :  { %v1284_v16 = vpop.permute.xlu0 %1283 }
0x176c   :  { %v1286_v17 = vadd.f32 %v1284_v16, %v1276_v15 }
0x176d   :  { %v1295_v19 = vpop.permute.xlu1 %1294 }
0x176e   :  { %1299 = vrot.lane.b32.xlu0 %v1286_v17, %s1711_s28  ;;  %v1297_v20 = vadd.f32 %v1295_v19, %v1287_v25 }
0x1770   :  { %v1320_v47 = vsel %vm1170_vm0, %v1297_v20, %v1178_v18 }
0x177a   :  { %v1312_v26 = vpop.permute.xlu1 %1311 }
0x177b   :  { %vm1313_vm2 = vcmp.eq.s32.totalorder %v1312_v26, 1 }
0x17e0   :  { %v1300_v21 = vpop.permute.xlu0 %1299 }
0x17e1   :  { %v1302_v22 = vsel %vm328_vm3, %v1300_v21, %v1297_v20 }
0x17e2   :  { %1682 = vtanh.f32 %v1302_v22 }
0x17ef   :  { %v1683_v23 = vpop.eup %1682 }
0x17f0   :  { %1315 = vrot.lane.b32.xlu1 %v1683_v23, %s1709_s23  ;;  %1305 = vrot.lane.b32.xlu0 %v1683_v23, %s1711_s28 }
0x1862   :  { %v1316_v24 = vpop.permute.xlu1 %1315  ;;  %v1306_v49 = vpop.permute.xlu0 %1305 }
0x1863   :  { %v1318_v50 = vmul.f32 %v1681_v5, %v1316_v24  ;;  %v1308_v63 = vmul.f32 %v1679_v10, %v1306_v49 }
0x1865   :  { %v1319_v61 = vsel %vm1170_vm0, %v1318_v50, %v2422_v36  ;;  %v1314_v29 = vsel %vm1313_vm2, %v1308_v63, %v2427_v54  ;;  %v1431_v36 = vld [vmem:[%s2505_s5 + $0x18] sm:$0xff]  ;;  %v1430_v54 = vld [vmem:[%s2505_s5 + $0x10] sm:$0xff] }
0x1866   :  { %1326 = vrot.lane.b32.xlu1 %v1319_v61, %s1709_s23  ;;  %1322 = vrot.lane.b32.xlu0 %v1314_v29, %s1710_s3 }
0x1867   :  { %1560 = vmatpush3.msra.mxu1 %v1431_v36 }
0x1868   :  { %1561 = vmatprep.subr.mxu1 %v1707_v3 }
0x1869   :  { %1562 = vmatpush3.msra.mxu1 %v1430_v54 }
0x186a   :  { %1563 = vmatprep.subr.mxu1 %v1707_v3 }
0x186b   :  { %1564 = vmatpush3.msra.mxu1 %v1429_v53 }
0x186c   :  { %1565 = vmatprep.subr.mxu1 %v1707_v3 }
0x186d   :  { %1566 = vmatpush3.msra.mxu1 %v1428_v41 }
0x18d8   :  { %v1327_v0 = vpop.permute.xlu1 %1326  ;;  %v1323_v30 = vpop.permute.xlu0 %1322 }
0x18d9   :  { %v1329_v35 = vsel %vm328_vm3, %v1323_v30, %v1327_v0 }
0x18da   :  { %1550 = vmatmul.mubr.msk.f32.vlgmr.msra.gmra.mxu0 %vm219_vm4, %v1329_v35  ;;  %vm1712_vm4 = vmmov 0  }
0x18db   :  { %1567 = vmatprep.mubr.msk.f32.mxu1 %vm1712_vm4, %v1707_v3 }
0x199a   :  { %v1399_v33 = vpop.f32.mrf.mxu0 }
0x199c   :  { %v1400_v48 = vpop.f32.mrf.mxu0 }
0x199d   :  { %v1401_v37 = vadd.f32 %v1400_v48, %v2439_v32 }
0x199f   :  { %1684 = vtanh.f32 %v1401_v37  ;;  %v1551_v56 = vmul.f32 -1.442695, %v1401_v37 }
0x19a1   :  { %1686 = vpow2.f32 %v1551_v56 }
0x19ac   :  { %v1685_v44 = vpop.eup %1684 }
0x19ad   :  { %1412 = vrot.lane.b32.xlu0 %v1685_v44, %s1709_s23 }
0x19ae   :  { %v1687_v46 = vpop.eup %1686 }
0x19af   :  { %v1406_v51 = vadd.f32 1.0, %v1687_v46 }
0x19b1   :  { %1688 = vrcp.f32 %v1406_v51 }
0x19be   :  { %v1689_v45 = vpop.eup %1688 }
0x19bf   :  { %v1410_v52 = vmul.f32 %v1689_v45, %v1320_v47 }
0x1a1f   :  { %v1413_v11 = vpop.permute.xlu0 %1412 }
0x1a20   :  { %v1415_v38 = vmul.f32 %v1689_v45, %v1413_v11 }
0x1a22   :  { %1417 = vrot.lane.b32.xlu1 %v1415_v38, %s1710_s3 }
0x1a94   :  { %v1418_v39 = vpop.permute.xlu1 %1417 }
0x1a95   :  { %v1420_v13 = vadd.f32 %v1418_v39, %v1410_v52 }
0x1a97   :  { %1690 = vtanh.f32 %v1420_v13 }
0x1aa4   :  { %v1691_v42 = vpop.eup %1690 }
0x1aa5   :  { %1423 = vrot.lane.b32.xlu0 %v1691_v42, %s1709_s23 }
0x1b17   :  { %v1424_v55 = vpop.permute.xlu0 %1423 }
0x1b18   :  { %v1426_v6 = vmul.f32 %v1689_v45, %v1424_v55 }
0x1b1a   :  { %v1427_v34 = vsel %vm1313_vm2, %v1426_v6, %v1319_v61 }
0x1b1b   :  { %1440 = vrot.lane.b32.xlu1 %v1427_v34, %s1710_s3 }
0x1b8d   :  { %v1441_v32 = vpop.permute.xlu1 %1440 }
0x1b8e   :  { %1568 = vmatmul.mubr.msk.f32.vlgmr.msra.gmra.mxu1 %vm328_vm3, %v1441_v32 }
0x1c4e   :  { %v1510_v60 = vpop.f32.mrf.mxu1 }
0x1c4f   :  { %v1511_v3 = vadd.f32 %v1552_v43, %v1510_v60 }
0x1c50   :  { %v1569_v40 = vpop.f32.mrf.mxu1 }
0x1c51   :  { %1515 = vst.msk [vmem:[%s2507_s7] sm:$0xff] %vm1514_vm5, %v1511_v3 }

</bundles_post_ra>
